<compile_context>
chip_gen: v6e
topology: v6e:2x2x1
jax: 0.10.0
libtpu: 0.0.40
codegen_flags: <defaults>
</compile_context>

<pallas_src>
import jax
import jax.numpy as jnp
from jax.experimental import pallas as pl
from jax.experimental.pallas import tpu as pltpu


def _softplus(v):
    # Numerically-stable softplus (matches torch.nn.functional.softplus).
    return jnp.maximum(v, 0.0) + jnp.log(1.0 + jnp.exp(-jnp.abs(v)))


def _sigmoid(v):
    # 1 / (1 + exp(-v)) with the divide on the EUP (approx vrcp).
    return pl.reciprocal(1.0 + jnp.exp(-v), approx=True)


def _make_vae_kernel(z_size):
    def vae_kernel(
        x_ref, eps_ref,
        w_enc1, b_enc1, w_enc2, b_enc2,
        w_musig, b_musig,
        w_dec1, b_dec1, w_dec2, b_dec2, w_dec3, b_dec3,
        mu_out, sigma_out, x_out,
    ):
        # All activations are [features, batch_tile] (batch on the lane axis).
        def lin(w_ref, h, b_ref):
            w = w_ref[...]
            return (
                jnp.dot(w, h.astype(w.dtype), preferred_element_type=jnp.float32)
                + b_ref[...]
            )

        x = x_ref[...].astype(jnp.float32)            # [input, Bt]

        # Encoder
        h = _softplus(lin(w_enc1, x, b_enc1))          # [hidden, Bt]
        h = _softplus(lin(w_enc2, h, b_enc2))          # [hidden, Bt]

        # Fused latent heads: one [2z, hidden] matmul, then sublane slice.
        ms = lin(w_musig, h, b_musig)                  # [2z, Bt]
        mu = ms[:z_size, :]
        sigma = ms[z_size:, :]

        # Reparameterization trick
        z = mu + sigma * eps_ref[...].astype(jnp.float32)
        z = _softplus(z)

        # Decoder
        d = _softplus(lin(w_dec1, z, b_dec1))          # [hidden, Bt]
        d = _softplus(lin(w_dec2, d, b_dec2))          # [hidden, Bt]
        out = _sigmoid(lin(w_dec3, d, b_dec3))         # [input, Bt]

        mu_out[...] = mu.astype(mu_out.dtype)
        sigma_out[...] = sigma.astype(sigma_out.dtype)
        x_out[...] = out.astype(x_out.dtype)

    return vae_kernel


def vae_forward(x, eps, params, *, batch_tile=256, mxu_dtype=jnp.float32):
    """VAE forward.

    x:   [B, input_size] float32
    eps: [B, z_size]     float32 (the randn_like noise)
    params: PyTorch-layout weights [out, in] and biases [out, 1], float32.
    mxu_dtype: dtype of matmul operands (jnp.float32 or jnp.bfloat16);
               accumulation and all activation math stay float32.
    Returns (mu [B, z], sigma [B, z], reconstruction [B, input_size]).
    """
    B, input_size = x.shape
    z_size = eps.shape[1]
    hidden_size = params["w_enc1"].shape[0]

    bt = min(batch_tile, B)
    assert B % bt == 0, "batch must be divisible by the batch tile"
    assert bt % 128 == 0 or bt == B, "lane-axis tile must be a multiple of 128"

    # Fuse mu / sigma heads into one weight / bias.
    w_musig = jnp.concatenate([params["w_mu"], params["w_sigma"]], axis=0)
    b_musig = jnp.concatenate([params["b_mu"], params["b_sigma"]], axis=0)

    def wcast(w):
        return w.astype(mxu_dtype)

    weight_args = [
        wcast(params["w_enc1"]), params["b_enc1"],
        wcast(params["w_enc2"]), params["b_enc2"],
        wcast(w_musig), b_musig,
        wcast(params["w_dec1"]), params["b_dec1"],
        wcast(params["w_dec2"]), params["b_dec2"],
        wcast(params["w_dec3"]), params["b_dec3"],
    ]

    # Transposed (lane-dense) layout: features on sublanes, batch on lanes.
    x_t = x.T                                          # [input, B]
    eps_t = eps.T                                      # [z, B]

    def full_spec(arr):
        return pl.BlockSpec(arr.shape, lambda i: (0, 0))

    grid = (B // bt,)
    in_specs = [
        pl.BlockSpec((input_size, bt), lambda i: (0, i)),   # x (transposed)
        pl.BlockSpec((z_size, bt), lambda i: (0, i)),       # eps (transposed)
    ] + [full_spec(w) for w in weight_args]

    out_specs = [
        pl.BlockSpec((z_size, bt), lambda i: (0, i)),       # mu^T
        pl.BlockSpec((z_size, bt), lambda i: (0, i)),       # sigma^T
        pl.BlockSpec((input_size, bt), lambda i: (0, i)),   # recon^T
    ]
    out_shape = (
        jax.ShapeDtypeStruct((z_size, B), jnp.float32),
        jax.ShapeDtypeStruct((z_size, B), jnp.float32),
        jax.ShapeDtypeStruct((input_size, B), jnp.float32),
    )

    mu_t, sigma_t, recon_t = pl.pallas_call(
        _make_vae_kernel(z_size),
        out_shape=out_shape,
        grid_spec=pltpu.PrefetchScalarGridSpec(
            num_scalar_prefetch=0,
            grid=grid,
            in_specs=in_specs,
            out_specs=out_specs,
        ),
        compiler_params=pltpu.CompilerParams(
            dimension_semantics=("parallel",)),
    )(x_t, eps_t, *weight_args)

    return mu_t.T, sigma_t.T, recon_t.T


def init_vae_params(key, input_size, hidden_size, z_size):
    """Deterministic init mimicking nn.Linear default U(-1/sqrt(fan_in), +).

    Weights are [out_features, in_features]; biases are [out_features, 1].
    """
    shapes = {
        "enc1": (input_size, hidden_size),
        "enc2": (hidden_size, hidden_size),
        "mu": (hidden_size, z_size),
        "sigma": (hidden_size, z_size),
        "dec1": (z_size, hidden_size),
        "dec2": (hidden_size, hidden_size),
        "dec3": (hidden_size, input_size),
    }
    params = {}
    for name, (fan_in, fan_out) in shapes.items():
        key, kw, kb = jax.random.split(key, 3)
        bound = 1.0 / jnp.sqrt(jnp.float32(fan_in))
        params[f"w_{name}"] = jax.random.uniform(
            kw, (fan_out, fan_in), jnp.float32, -bound, bound)
        params[f"b_{name}"] = jax.random.uniform(
            kb, (fan_out, 1), jnp.float32, -bound, bound)
    return params


def vae_reference(x, eps, params, mxu_dtype=jnp.float32):
    """Pure-JAX reference (standard batch-major layout)."""
    def lin(h, name):
        w = params[f"w_{name}"].astype(mxu_dtype)
        b = params[f"b_{name}"][:, 0]
        return jnp.dot(h.astype(mxu_dtype), w.T,
                       preferred_element_type=jnp.float32) + b

    sp = jax.nn.softplus
    h = sp(lin(x, "enc1"))
    h = sp(lin(h, "enc2"))
    mu = lin(h, "mu")
    sigma = lin(h, "sigma")
    z = sp(mu + sigma * eps)
    d = sp(lin(z, "dec1"))
    d = sp(lin(d, "dec2"))
    out = jax.nn.sigmoid(lin(d, "dec3"))
    return mu, sigma, out


if __name__ == "__main__":
    input_size, hidden_size, z_size = 64, 32, 16
    batch = 512          # 2 grid steps of 256 rows -> both v7x TCs get work.

    key = jax.random.PRNGKey(0)
    key, kx, keps, kp = jax.random.split(key, 4)

    x = jax.random.uniform(kx, (batch, input_size), jnp.float32)
    eps = jax.random.normal(keps, (batch, z_size), jnp.float32)  # randn_like(sigma)
    params = init_vae_params(kp, input_size, hidden_size, z_size)

    # f32-MXU path: matches the reference tightly (recon tolerance covers the
    # approx-reciprocal sigmoid on the EUP).
    mu, sigma, recon = vae_forward(x, eps, params, batch_tile=256)
    jax.block_until_ready((mu, sigma, recon))
    mu_r, sigma_r, recon_r = vae_reference(x, eps, params)
    assert jnp.allclose(mu, mu_r, atol=1e-5, rtol=1e-5)
    assert jnp.allclose(sigma, sigma_r, atol=1e-5, rtol=1e-5)
    assert jnp.allclose(recon, recon_r, atol=1e-2, rtol=1e-2)

    # bf16-at-the-MXU fast path (v6e/v7x), checked against a bf16-operand ref.
    mu_b, sigma_b, recon_b = vae_forward(
        x, eps, params, batch_tile=256, mxu_dtype=jnp.bfloat16)
    jax.block_until_ready((mu_b, sigma_b, recon_b))
    mu_rb, sigma_rb, recon_rb = vae_reference(x, eps, params,
                                              mxu_dtype=jnp.bfloat16)
    assert jnp.allclose(mu_b, mu_rb, atol=2e-2, rtol=2e-2)
    assert jnp.allclose(sigma_b, sigma_rb, atol=2e-2, rtol=2e-2)
    assert jnp.allclose(recon_b, recon_rb, atol=2e-2, rtol=2e-2)

    print("KERNEL_OK")
</pallas_src>

<mosaic_0001>
module attributes {stable_mosaic.version = 11 : i64} {
  func.func @vae_kernel(%arg0: i32, %arg1: memref<64x256xf32, #tpu.memory_space<vmem>>, %arg2: memref<16x256xf32, #tpu.memory_space<vmem>>, %arg3: memref<32x64xf32, #tpu.memory_space<vmem>>, %arg4: memref<32x1xf32, #tpu.memory_space<vmem>>, %arg5: memref<32x32xf32, #tpu.memory_space<vmem>>, %arg6: memref<32x1xf32, #tpu.memory_space<vmem>>, %arg7: memref<32x32xf32, #tpu.memory_space<vmem>>, %arg8: memref<32x1xf32, #tpu.memory_space<vmem>>, %arg9: memref<32x16xf32, #tpu.memory_space<vmem>>, %arg10: memref<32x1xf32, #tpu.memory_space<vmem>>, %arg11: memref<32x32xf32, #tpu.memory_space<vmem>>, %arg12: memref<32x1xf32, #tpu.memory_space<vmem>>, %arg13: memref<64x32xf32, #tpu.memory_space<vmem>>, %arg14: memref<64x1xf32, #tpu.memory_space<vmem>>, %arg15: memref<16x256xf32, #tpu.memory_space<vmem>>, %arg16: memref<16x256xf32, #tpu.memory_space<vmem>>, %arg17: memref<64x256xf32, #tpu.memory_space<vmem>>) attributes {dimension_semantics = [#tpu.dimension_semantics<parallel>], iteration_bounds = array<i64: 2>, scalar_prefetch = 0 : i64, scratch_operands = 0 : i64, tpu.core_type = #tpu.core_type<tc>, window_params = [{transform_indices = @transform_0, window_bounds = array<i64: 64, 256>}, {transform_indices = @transform_1, window_bounds = array<i64: 16, 256>}, {pipeline_mode = #tpu.pipeline_mode<synchronous>, transform_indices = @transform_2, window_bounds = array<i64: 32, 64>}, {pipeline_mode = #tpu.pipeline_mode<synchronous>, transform_indices = @transform_3, window_bounds = array<i64: 32, 1>}, {pipeline_mode = #tpu.pipeline_mode<synchronous>, transform_indices = @transform_4, window_bounds = array<i64: 32, 32>}, {pipeline_mode = #tpu.pipeline_mode<synchronous>, transform_indices = @transform_5, window_bounds = array<i64: 32, 1>}, {pipeline_mode = #tpu.pipeline_mode<synchronous>, transform_indices = @transform_6, window_bounds = array<i64: 32, 32>}, {pipeline_mode = #tpu.pipeline_mode<synchronous>, transform_indices = @transform_7, window_bounds = array<i64: 32, 1>}, {pipeline_mode = #tpu.pipeline_mode<synchronous>, transform_indices = @transform_8, window_bounds = array<i64: 32, 16>}, {pipeline_mode = #tpu.pipeline_mode<synchronous>, transform_indices = @transform_9, window_bounds = array<i64: 32, 1>}, {pipeline_mode = #tpu.pipeline_mode<synchronous>, transform_indices = @transform_10, window_bounds = array<i64: 32, 32>}, {pipeline_mode = #tpu.pipeline_mode<synchronous>, transform_indices = @transform_11, window_bounds = array<i64: 32, 1>}, {pipeline_mode = #tpu.pipeline_mode<synchronous>, transform_indices = @transform_12, window_bounds = array<i64: 64, 32>}, {pipeline_mode = #tpu.pipeline_mode<synchronous>, transform_indices = @transform_13, window_bounds = array<i64: 64, 1>}, {transform_indices = @transform_14, window_bounds = array<i64: 16, 256>}, {transform_indices = @transform_15, window_bounds = array<i64: 16, 256>}, {transform_indices = @transform_16, window_bounds = array<i64: 64, 256>}]} {
    %c0 = arith.constant 0 : index
    %c0_0 = arith.constant 0 : index
    %0 = vector.load %arg1[%c0, %c0_0] : memref<64x256xf32, #tpu.memory_space<vmem>>, vector<64x256xf32>
    %c0_1 = arith.constant 0 : index
    %c0_2 = arith.constant 0 : index
    %1 = vector.load %arg3[%c0_1, %c0_2] : memref<32x64xf32, #tpu.memory_space<vmem>>, vector<32x64xf32>
    %cst = arith.constant dense<0.000000e+00> : vector<32x256xf32>
    %2 = tpu.matmul %1, %0, %cst {dimension_numbers = #tpu.dot_dimension_numbers<[1], [0], [0], [1], [0, 0, 1, 1], [], []>} : vector<32x64xf32>, vector<64x256xf32>, vector<32x256xf32> -> vector<32x256xf32>
    %c0_3 = arith.constant 0 : index
    %c0_4 = arith.constant 0 : index
    %3 = vector.load %arg4[%c0_3, %c0_4] : memref<32x1xf32, #tpu.memory_space<vmem>>, vector<32x1xf32>
    %4 = vector.broadcast %3 : vector<32x1xf32> to vector<32x256xf32>
    %5 = arith.addf %2, %4 : vector<32x256xf32>
    %cst_5 = arith.constant 0.000000e+00 : f32
    %6 = vector.broadcast %cst_5 : f32 to vector<32x256xf32>
    %7 = arith.maximumf %5, %6 : vector<32x256xf32>
    %8 = math.absf %5 : vector<32x256xf32>
    %cst_6 = arith.constant 0.000000e+00 : f32
    %9 = vector.broadcast %cst_6 : f32 to vector<32x256xf32>
    %10 = arith.subf %9, %8 : vector<32x256xf32>
    %11 = math.exp %10 : vector<32x256xf32>
    %cst_7 = arith.constant 1.000000e+00 : f32
    %12 = vector.broadcast %cst_7 : f32 to vector<32x256xf32>
    %13 = arith.addf %12, %11 : vector<32x256xf32>
    %14 = math.log %13 : vector<32x256xf32>
    %15 = arith.addf %7, %14 : vector<32x256xf32>
    %c0_8 = arith.constant 0 : index
    %c0_9 = arith.constant 0 : index
    %16 = vector.load %arg5[%c0_8, %c0_9] : memref<32x32xf32, #tpu.memory_space<vmem>>, vector<32x32xf32>
    %cst_10 = arith.constant dense<0.000000e+00> : vector<32x256xf32>
    %17 = tpu.matmul %16, %15, %cst_10 {dimension_numbers = #tpu.dot_dimension_numbers<[1], [0], [0], [1], [0, 0, 1, 1], [], []>} : vector<32x32xf32>, vector<32x256xf32>, vector<32x256xf32> -> vector<32x256xf32>
    %c0_11 = arith.constant 0 : index
    %c0_12 = arith.constant 0 : index
    %18 = vector.load %arg6[%c0_11, %c0_12] : memref<32x1xf32, #tpu.memory_space<vmem>>, vector<32x1xf32>
    %19 = vector.broadcast %18 : vector<32x1xf32> to vector<32x256xf32>
    %20 = arith.addf %17, %19 : vector<32x256xf32>
    %cst_13 = arith.constant 0.000000e+00 : f32
    %21 = vector.broadcast %cst_13 : f32 to vector<32x256xf32>
    %22 = arith.maximumf %20, %21 : vector<32x256xf32>
    %23 = math.absf %20 : vector<32x256xf32>
    %cst_14 = arith.constant 0.000000e+00 : f32
    %24 = vector.broadcast %cst_14 : f32 to vector<32x256xf32>
    %25 = arith.subf %24, %23 : vector<32x256xf32>
    %26 = math.exp %25 : vector<32x256xf32>
    %cst_15 = arith.constant 1.000000e+00 : f32
    %27 = vector.broadcast %cst_15 : f32 to vector<32x256xf32>
    %28 = arith.addf %27, %26 : vector<32x256xf32>
    %29 = math.log %28 : vector<32x256xf32>
    %30 = arith.addf %22, %29 : vector<32x256xf32>
    %c0_16 = arith.constant 0 : index
    %c0_17 = arith.constant 0 : index
    %31 = vector.load %arg7[%c0_16, %c0_17] : memref<32x32xf32, #tpu.memory_space<vmem>>, vector<32x32xf32>
    %cst_18 = arith.constant dense<0.000000e+00> : vector<32x256xf32>
    %32 = tpu.matmul %31, %30, %cst_18 {dimension_numbers = #tpu.dot_dimension_numbers<[1], [0], [0], [1], [0, 0, 1, 1], [], []>} : vector<32x32xf32>, vector<32x256xf32>, vector<32x256xf32> -> vector<32x256xf32>
    %c0_19 = arith.constant 0 : index
    %c0_20 = arith.constant 0 : index
    %33 = vector.load %arg8[%c0_19, %c0_20] : memref<32x1xf32, #tpu.memory_space<vmem>>, vector<32x1xf32>
    %34 = vector.broadcast %33 : vector<32x1xf32> to vector<32x256xf32>
    %35 = arith.addf %32, %34 : vector<32x256xf32>
    %36 = vector.extract_strided_slice %35 {offsets = [0, 0], sizes = [16, 256], strides = [1, 1]} : vector<32x256xf32> to vector<16x256xf32>
    %37 = vector.extract_strided_slice %35 {offsets = [16, 0], sizes = [16, 256], strides = [1, 1]} : vector<32x256xf32> to vector<16x256xf32>
    %c0_21 = arith.constant 0 : index
    %c0_22 = arith.constant 0 : index
    %38 = vector.load %arg2[%c0_21, %c0_22] : memref<16x256xf32, #tpu.memory_space<vmem>>, vector<16x256xf32>
    %39 = arith.mulf %37, %38 : vector<16x256xf32>
    %40 = arith.addf %36, %39 : vector<16x256xf32>
    %cst_23 = arith.constant 0.000000e+00 : f32
    %41 = vector.broadcast %cst_23 : f32 to vector<16x256xf32>
    %42 = arith.maximumf %40, %41 : vector<16x256xf32>
    %43 = math.absf %40 : vector<16x256xf32>
    %cst_24 = arith.constant 0.000000e+00 : f32
    %44 = vector.broadcast %cst_24 : f32 to vector<16x256xf32>
    %45 = arith.subf %44, %43 : vector<16x256xf32>
    %46 = math.exp %45 : vector<16x256xf32>
    %cst_25 = arith.constant 1.000000e+00 : f32
    %47 = vector.broadcast %cst_25 : f32 to vector<16x256xf32>
    %48 = arith.addf %47, %46 : vector<16x256xf32>
    %49 = math.log %48 : vector<16x256xf32>
    %50 = arith.addf %42, %49 : vector<16x256xf32>
    %c0_26 = arith.constant 0 : index
    %c0_27 = arith.constant 0 : index
    %51 = vector.load %arg9[%c0_26, %c0_27] : memref<32x16xf32, #tpu.memory_space<vmem>>, vector<32x16xf32>
    %cst_28 = arith.constant dense<0.000000e+00> : vector<32x256xf32>
    %52 = tpu.matmul %51, %50, %cst_28 {dimension_numbers = #tpu.dot_dimension_numbers<[1], [0], [0], [1], [0, 0, 1, 1], [], []>} : vector<32x16xf32>, vector<16x256xf32>, vector<32x256xf32> -> vector<32x256xf32>
    %c0_29 = arith.constant 0 : index
    %c0_30 = arith.constant 0 : index
    %53 = vector.load %arg10[%c0_29, %c0_30] : memref<32x1xf32, #tpu.memory_space<vmem>>, vector<32x1xf32>
    %54 = vector.broadcast %53 : vector<32x1xf32> to vector<32x256xf32>
    %55 = arith.addf %52, %54 : vector<32x256xf32>
    %cst_31 = arith.constant 0.000000e+00 : f32
    %56 = vector.broadcast %cst_31 : f32 to vector<32x256xf32>
    %57 = arith.maximumf %55, %56 : vector<32x256xf32>
    %58 = math.absf %55 : vector<32x256xf32>
    %cst_32 = arith.constant 0.000000e+00 : f32
    %59 = vector.broadcast %cst_32 : f32 to vector<32x256xf32>
    %60 = arith.subf %59, %58 : vector<32x256xf32>
    %61 = math.exp %60 : vector<32x256xf32>
    %cst_33 = arith.constant 1.000000e+00 : f32
    %62 = vector.broadcast %cst_33 : f32 to vector<32x256xf32>
    %63 = arith.addf %62, %61 : vector<32x256xf32>
    %64 = math.log %63 : vector<32x256xf32>
    %65 = arith.addf %57, %64 : vector<32x256xf32>
    %c0_34 = arith.constant 0 : index
    %c0_35 = arith.constant 0 : index
    %66 = vector.load %arg11[%c0_34, %c0_35] : memref<32x32xf32, #tpu.memory_space<vmem>>, vector<32x32xf32>
    %cst_36 = arith.constant dense<0.000000e+00> : vector<32x256xf32>
    %67 = tpu.matmul %66, %65, %cst_36 {dimension_numbers = #tpu.dot_dimension_numbers<[1], [0], [0], [1], [0, 0, 1, 1], [], []>} : vector<32x32xf32>, vector<32x256xf32>, vector<32x256xf32> -> vector<32x256xf32>
    %c0_37 = arith.constant 0 : index
    %c0_38 = arith.constant 0 : index
    %68 = vector.load %arg12[%c0_37, %c0_38] : memref<32x1xf32, #tpu.memory_space<vmem>>, vector<32x1xf32>
    %69 = vector.broadcast %68 : vector<32x1xf32> to vector<32x256xf32>
    %70 = arith.addf %67, %69 : vector<32x256xf32>
    %cst_39 = arith.constant 0.000000e+00 : f32
    %71 = vector.broadcast %cst_39 : f32 to vector<32x256xf32>
    %72 = arith.maximumf %70, %71 : vector<32x256xf32>
    %73 = math.absf %70 : vector<32x256xf32>
    %cst_40 = arith.constant 0.000000e+00 : f32
    %74 = vector.broadcast %cst_40 : f32 to vector<32x256xf32>
    %75 = arith.subf %74, %73 : vector<32x256xf32>
    %76 = math.exp %75 : vector<32x256xf32>
    %cst_41 = arith.constant 1.000000e+00 : f32
    %77 = vector.broadcast %cst_41 : f32 to vector<32x256xf32>
    %78 = arith.addf %77, %76 : vector<32x256xf32>
    %79 = math.log %78 : vector<32x256xf32>
    %80 = arith.addf %72, %79 : vector<32x256xf32>
    %c0_42 = arith.constant 0 : index
    %c0_43 = arith.constant 0 : index
    %81 = vector.load %arg13[%c0_42, %c0_43] : memref<64x32xf32, #tpu.memory_space<vmem>>, vector<64x32xf32>
    %cst_44 = arith.constant dense<0.000000e+00> : vector<64x256xf32>
    %82 = tpu.matmul %81, %80, %cst_44 {dimension_numbers = #tpu.dot_dimension_numbers<[1], [0], [0], [1], [0, 0, 1, 1], [], []>} : vector<64x32xf32>, vector<32x256xf32>, vector<64x256xf32> -> vector<64x256xf32>
    %c0_45 = arith.constant 0 : index
    %c0_46 = arith.constant 0 : index
    %83 = vector.load %arg14[%c0_45, %c0_46] : memref<64x1xf32, #tpu.memory_space<vmem>>, vector<64x1xf32>
    %84 = vector.broadcast %83 : vector<64x1xf32> to vector<64x256xf32>
    %85 = arith.addf %82, %84 : vector<64x256xf32>
    %cst_47 = arith.constant 0.000000e+00 : f32
    %86 = vector.broadcast %cst_47 : f32 to vector<64x256xf32>
    %87 = arith.subf %86, %85 : vector<64x256xf32>
    %88 = math.exp %87 : vector<64x256xf32>
    %cst_48 = arith.constant 1.000000e+00 : f32
    %89 = vector.broadcast %cst_48 : f32 to vector<64x256xf32>
    %90 = arith.addf %89, %88 : vector<64x256xf32>
    %91 = tpu.reciprocal %90 {approx = true} : vector<64x256xf32> -> vector<64x256xf32>
    %c0_49 = arith.constant 0 : index
    %c0_50 = arith.constant 0 : index
    %92 = vector.load %arg15[%c0_49, %c0_50] : memref<16x256xf32, #tpu.memory_space<vmem>>, vector<16x256xf32>
    tpu.vector_store %arg15[%c0_49, %c0_50], %36 {strides = array<i32>} : memref<16x256xf32, #tpu.memory_space<vmem>>, vector<16x256xf32>,
    %c0_51 = arith.constant 0 : index
    %c0_52 = arith.constant 0 : index
    %93 = vector.load %arg16[%c0_51, %c0_52] : memref<16x256xf32, #tpu.memory_space<vmem>>, vector<16x256xf32>
    tpu.vector_store %arg16[%c0_51, %c0_52], %37 {strides = array<i32>} : memref<16x256xf32, #tpu.memory_space<vmem>>, vector<16x256xf32>,
    %c0_53 = arith.constant 0 : index
    %c0_54 = arith.constant 0 : index
    %94 = vector.load %arg17[%c0_53, %c0_54] : memref<64x256xf32, #tpu.memory_space<vmem>>, vector<64x256xf32>
    tpu.vector_store %arg17[%c0_53, %c0_54], %91 {strides = array<i32>} : memref<64x256xf32, #tpu.memory_space<vmem>>, vector<64x256xf32>,
    return
  }
  func.func @transform_0(%arg0: i32) -> (i32, i32) {
    %c0_i32 = arith.constant 0 : i32
    %c0_i32_0 = arith.constant 0 : i32
    return %c0_i32, %arg0 : i32, i32
  }
  func.func @transform_1(%arg0: i32) -> (i32, i32) {
    %c0_i32 = arith.constant 0 : i32
    %c0_i32_0 = arith.constant 0 : i32
    return %c0_i32, %arg0 : i32, i32
  }
  func.func @transform_2(%arg0: i32) -> (i32, i32) {
    %c0_i32 = arith.constant 0 : i32
    %c0_i32_0 = arith.constant 0 : i32
    %c0_i32_1 = arith.constant 0 : i32
    return %c0_i32, %c0_i32_0 : i32, i32
  }
  func.func @transform_3(%arg0: i32) -> (i32, i32) {
    %c0_i32 = arith.constant 0 : i32
    %c0_i32_0 = arith.constant 0 : i32
    %c0_i32_1 = arith.constant 0 : i32
    return %c0_i32, %c0_i32_0 : i32, i32
  }
  func.func @transform_4(%arg0: i32) -> (i32, i32) {
    %c0_i32 = arith.constant 0 : i32
    %c0_i32_0 = arith.constant 0 : i32
    %c0_i32_1 = arith.constant 0 : i32
    return %c0_i32, %c0_i32_0 : i32, i32
  }
  func.func @transform_5(%arg0: i32) -> (i32, i32) {
    %c0_i32 = arith.constant 0 : i32
    %c0_i32_0 = arith.constant 0 : i32
    %c0_i32_1 = arith.constant 0 : i32
    return %c0_i32, %c0_i32_0 : i32, i32
  }
  func.func @transform_6(%arg0: i32) -> (i32, i32) {
    %c0_i32 = arith.constant 0 : i32
    %c0_i32_0 = arith.constant 0 : i32
    %c0_i32_1 = arith.constant 0 : i32
    return %c0_i32, %c0_i32_0 : i32, i32
  }
  func.func @transform_7(%arg0: i32) -> (i32, i32) {
    %c0_i32 = arith.constant 0 : i32
    %c0_i32_0 = arith.constant 0 : i32
    %c0_i32_1 = arith.constant 0 : i32
    return %c0_i32, %c0_i32_0 : i32, i32
  }
  func.func @transform_8(%arg0: i32) -> (i32, i32) {
    %c0_i32 = arith.constant 0 : i32
    %c0_i32_0 = arith.constant 0 : i32
    %c0_i32_1 = arith.constant 0 : i32
    return %c0_i32, %c0_i32_0 : i32, i32
  }
  func.func @transform_9(%arg0: i32) -> (i32, i32) {
    %c0_i32 = arith.constant 0 : i32
    %c0_i32_0 = arith.constant 0 : i32
    %c0_i32_1 = arith.constant 0 : i32
    return %c0_i32, %c0_i32_0 : i32, i32
  }
  func.func @transform_10(%arg0: i32) -> (i32, i32) {
    %c0_i32 = arith.constant 0 : i32
    %c0_i32_0 = arith.constant 0 : i32
    %c0_i32_1 = arith.constant 0 : i32
    return %c0_i32, %c0_i32_0 : i32, i32
  }
  func.func @transform_11(%arg0: i32) -> (i32, i32) {
    %c0_i32 = arith.constant 0 : i32
    %c0_i32_0 = arith.constant 0 : i32
    %c0_i32_1 = arith.constant 0 : i32
    return %c0_i32, %c0_i32_0 : i32, i32
  }
  func.func @transform_12(%arg0: i32) -> (i32, i32) {
    %c0_i32 = arith.constant 0 : i32
    %c0_i32_0 = arith.constant 0 : i32
    %c0_i32_1 = arith.constant 0 : i32
    return %c0_i32, %c0_i32_0 : i32, i32
  }
  func.func @transform_13(%arg0: i32) -> (i32, i32) {
    %c0_i32 = arith.constant 0 : i32
    %c0_i32_0 = arith.constant 0 : i32
    %c0_i32_1 = arith.constant 0 : i32
    return %c0_i32, %c0_i32_0 : i32, i32
  }
  func.func @transform_14(%arg0: i32) -> (i32, i32) {
    %c0_i32 = arith.constant 0 : i32
    %c0_i32_0 = arith.constant 0 : i32
    return %c0_i32, %arg0 : i32, i32
  }
  func.func @transform_15(%arg0: i32) -> (i32, i32) {
    %c0_i32 = arith.constant 0 : i32
    %c0_i32_0 = arith.constant 0 : i32
    return %c0_i32, %arg0 : i32, i32
  }
  func.func @transform_16(%arg0: i32) -> (i32, i32) {
    %c0_i32 = arith.constant 0 : i32
    %c0_i32_0 = arith.constant 0 : i32
    return %c0_i32, %arg0 : i32, i32
  }
}

</mosaic_0001>

<bundles_post_ra>
// kernel: tpu_custom_call.1
= control target key start
LH: loop header
LB: loop body
LE: loop exit
PB: predicated region body
PF: predicated region fallthrough
CT: control target
= control target key end

     0   :  { %s3522_s0 = inlined_call_operand.vmem [shape: f32[64,512], index: 0, kind: input, shape index: {}]   ;;  %s3523_s1 = inlined_call_operand.vmem [shape: f32[16,512], index: 1, kind: input, shape index: {}]   ;;  %s3524_s2 = inlined_call_operand.hbm [shape: f32[32,64], index: 2, kind: input, shape index: {}]   ;;  %s3525_s3 = inlined_call_operand.vmem [shape: f32[32,1], index: 3, kind: input, shape index: {}]   ;;  %s3526_s4 = inlined_call_operand.hbm [shape: f32[32,32], index: 4, kind: input, shape index: {}]   ;;  %s3527_s5 = inlined_call_operand.vmem [shape: f32[32,1], index: 5, kind: input, shape index: {}]   ;;  %s3528_s6 = inlined_call_operand.vmem [shape: f32[32,32], index: 6, kind: input, shape index: {}]   ;;  %s3529_s7 = inlined_call_operand.vmem [shape: f32[32,1], index: 7, kind: input, shape index: {}]   ;;  %s3530_s8 = inlined_call_operand.vmem [shape: f32[32,16], index: 8, kind: input, shape index: {}]   ;;  %s3531_s9 = inlined_call_operand.vmem [shape: f32[32,1], index: 9, kind: input, shape index: {}]   ;;  %s3532_s10 = inlined_call_operand.hbm [shape: f32[32,32], index: 10, kind: input, shape index: {}]   ;;  %s3533_s11 = inlined_call_operand.vmem [shape: f32[32,1], index: 11, kind: input, shape index: {}]   ;;  %s3534_s12 = inlined_call_operand.vmem [shape: f32[64,32], index: 12, kind: input, shape index: {}]   ;;  %s3535_s13 = inlined_call_operand.vmem [shape: f32[64,1], index: 13, kind: input, shape index: {}]   ;;  %s3536_s14 = inlined_call_operand.hbm [shape: f32[16,512], index: 14, kind: output, shape index: {0}]   ;;  %s3537_s15 = inlined_call_operand.hbm [shape: f32[16,512], index: 15, kind: output, shape index: {1}]   ;;  %s3538_s16 = inlined_call_operand.hbm [shape: f32[64,512], index: 16, kind: output, shape index: {2}]  }
   0x1   :  { %3553 = sst [smem:[#allocation22_spill]] %s3522_s0 }
   0x2   :  { %3554 = sst [smem:[#allocation23_spill]] %s3523_s1 }
   0x3   :  { %3555 = sst [smem:[#allocation24_spill]] %s3524_s2 }
   0x4   :  { %3556 = sst [smem:[#allocation25_spill]] %s3525_s3 }
   0x5   :  { %3557 = sst [smem:[#allocation26_spill]] %s3526_s4 }
   0x6   :  { %3558 = sst [smem:[#allocation27_spill]] %s3527_s5 }
   0x7   :  { %3559 = sst [smem:[#allocation28_spill]] %s3536_s14 }
   0x8   :  { %3560 = sst [smem:[#allocation29_spill]] %s3537_s15 }
   0x9   :  { %3561 = sst [smem:[#allocation30_spill]] %s3538_s16 }
   0xa   :  { %22 = vsyncpa [#allocation5], 0 }
   0xb   :  { %23 = vsyncpa [#allocation8], 0 }
   0xc   :  { %24 = vsyncpa [#allocation6], 0 }
   0xd   :  { %26 = vsyncpa [#allocation6 + $0x1], 0 }
   0xe   :  { %27 = vsyncpa [#allocation12], 0 }
   0xf   :  { %29 = vsyncpa [#allocation12 + $0x1], 0  ;;  %s2886_s21 = smov 0   ;;  %s2888_s22 = smov 0  }
  0x10   :  { %s2890_s23 = smov 0   ;;  %s2892_s24 = smov 0  }
  0x11 LB: > { %3562 = sst [smem:[#allocation18_spill]] %s2774_s21  ;;  %s2907_s25 = sadd.s32 4294967295, %s2786_s24   ;;  %s2786_s24 = sphi %s2892_s24, %s3594_s24   ;;  %s2782_s23 = sphi %s2890_s23, %s3598_s23   ;;  %s2778_s22 = sphi %s2888_s22, %s3597_s22   ;;  %s2774_s21 = sphi %s2886_s21, %s3596_s21  }
  0x12   : > { %s3539_s26 = sadd.s32 4294967294, %s2786_s24   ;;  %s2911_s27 = sadd.s32 1, %s2786_s24  }
  0x13   : > { %3563 = sst [smem:[#allocation19_spill]] %s2911_s27  ;;  %s42_s28 = sadd.s32 1, %s2782_s23 }
  0x14   : > { %s39_s29 = ssub.s32 %s2786_s24, %s2911_s27  ;;  %p49_p0 = scmp.ne.s32.totalorder %s2782_s23, %s2778_s22 }
  0x15   : > { %p40_p1 = scmp.eq.s32.totalorder %s39_s29, 0  ;;  %p50_p2 = scmp.eq.s32.totalorder %s2786_s24, 0 }
  0x16   : > { %p357_p3 = scmp.eq.s32.totalorder %s2907_s25, 1  ;;  %p362_p4 = scmp.ne.s32.totalorder %s2778_s22, %s2774_s21 }
  0x17   : > { %s2923_s30 = scalar_select %p40_p1, %s2782_s23, %s42_s28  }
  0x18   : > { %p2925_p5 = por %p50_p2, %p49_p0  ;;  %p2929_p6 = por %p357_p3, %p49_p0 }
  0x19   : > { %3564 = sst [smem:[#allocation20_spill]] %s2923_s30  ;;  %p363_p7 = scmp.eq.s32.totalorder %s3539_s26, 1 }
  0x1a   : > { %s3566_s17 = scalar_select %p2929_p6, 1, 0 }
  0x1b   : > { %p2215_p8 = scmp.ge.s32.totalorder %s2786_s24, 1  ;;  %p422_p9 = scmp.lt.s32.totalorder %s2786_s24, 3 }
  0x1c   : > { %p2937_p10 = por %p363_p7, %p362_p4  ;;  %p3546_p11 = scmp.eq.s32.totalorder %s2907_s25, 0 }
  0x1d   : > { %p2942_p12 = pnand %p2215_p8, %p422_p9  ;;  %s2788_s20 = smov [#allocation7]  }
  0x1e   : > { %s3567_s18 = scalar_select %p2937_p10, 1, 0 }
  0x1f   : > { %s3569_s19 = scalar_select %p2942_p12, 1, 0 }
  0x20   : > { %3568 = sst [smem:[#allocation21_spill]] %s3567_s18  ;;  %p2305_p13 = pneg %p2942_p12 }
  0x21   : > { %s450_s28 = sshll.u32 %s2788_s20, 4  ;;  %s2789_s26 = smov [#allocation4]   ;;  %s451_s28 = int_to_ptr.vmem [resolvable:$true] %s450_s28 }
  0x22   : > { %p2950_p0 = pnand %p3546_p11, %p2305_p13  ;;  %s434_s30 = sshll.u32 %s2789_s26, 4  ;;  %s435_s30 = int_to_ptr.vmem [resolvable:$true] %s434_s30 }
  0x23   : > { %s2790_s27 = smov [#allocation9]   ;;  %s2595_s21 = scalar_lea.vmem %s451_s28, 512 }
  0x24   : > { %s478_s18 = sshll.u32 %s2790_s27, 4  ;;  %p2586_p1 = pneg %p2950_p0  ;;  %s479_s18 = int_to_ptr.vmem [resolvable:$true] %s478_s18 }
  0x25   : > { %p2596_p2 = scmp.ne.s32.totalorder %s451_s28, %s2595_s21  ;;  %p2603_p7 = scmp.lt.s32.totalorder %s451_s28, %s451_s28 }
  0x26   : > { %p2604_p8 = scmp.lt.s32.totalorder %s2595_s21, %s2595_s21 }
  0x27   : > { %p2598_p3 = pnand %p2596_p2, %p2586_p1 }
  0x28   : > { %p2605_p9 = por %p2604_p8, %p2603_p7 }
  0x29   : > { %p2599_p4 = pneg %p2598_p3 }
  0x2b   : > { %p2606_p13 = pnand %p2605_p9, %p2599_p4 }
  0x2d   : > { %2609 = shalt.err (!%p2606_p13)
}
  0x2e   : > { %s2791_s20 = smov 128   ;;  %s2792_s26 = smov 8  }
  0x2f   : > { %s3571_s4 = sld [smem:[#allocation26_spill]]  ;;  %s2621_s14 = scalar_lea.vmem %s435_s30, 512 }
  0x30   : > { %p2622_p11 = scmp.ne.s32.totalorder %s435_s30, %s2621_s14  ;;  %p2629_p10 = scmp.lt.s32.totalorder %s435_s30, %s435_s30 }
  0x31   : > { %p2630_p6 = scmp.lt.s32.totalorder %s2621_s14, %s2621_s14 }
  0x32   : > { %p2624_p2 = pnand %p2622_p11, %p2586_p1 }
  0x33   : > { %p2631_p7 = por %p2630_p6, %p2629_p10 }
  0x34   : > { %p2625_p3 = pneg %p2624_p2 }
  0x35   : > { %2311 = dma.hbm_to_vmem [thread:$0]  (!%p2950_p0), %s3571_s4, 512, %s451_s28, [#allocation8], %s2791_s20, %s2791_s20, %s2792_s26  }
  0x36   : > { %p2632_p4 = pnand %p2631_p7, %p2625_p3 }
  0x38   : > { %2635 = shalt.err (!%p2632_p4)
}
  0x39   : > { %s3572_s2 = sld [smem:[#allocation24_spill]]  ;;  %s2647_s16 = scalar_lea.vmem %s479_s18, 512 }
  0x3a   : > { %p2648_p8 = scmp.ne.s32.totalorder %s479_s18, %s2647_s16  ;;  %p2655_p13 = scmp.lt.s32.totalorder %s479_s18, %s479_s18 }
  0x3b   : > { %p2656_p2 = scmp.lt.s32.totalorder %s2647_s16, %s2647_s16 }
  0x3c   : > { %p2650_p9 = pnand %p2648_p8, %p2586_p1 }
  0x3d   : > { %p2657_p12 = por %p2656_p2, %p2655_p13 }
  0x3e   : > { %p2651_p11 = pneg %p2650_p9 }
  0x3f   : > { %2308 = dma.hbm_to_vmem [thread:$0]  (!%p2950_p0), %s3572_s2, 512, %s435_s30, [#allocation5], %s2791_s20, %s2791_s20, %s2792_s26  }
  0x40   : > { %p2658_p6 = pnand %p2657_p12, %p2651_p11 }
  0x42   : > { %2661 = shalt.err (!%p2658_p6)
}
  0x43   : > { %2314 = dma.hbm_to_vmem [thread:$0]  (!%p2950_p0), %s3532_s10, 512, %s479_s18, [#allocation8], %s2791_s20, %s2791_s20, %s2792_s26  }
  0x44   : > { %p2219_p10 = scmp.ge.s32.totalorder %s2786_s24, 2 }
  0x46   : > { %497 = sbr.rel (%p2219_p10) target bundleno = 105 (0x69), region = 64 }
  0x4b   : > { %500 = sbr.rel (!%p2925_p5) target bundleno = 93 (0x5d), region = 68  ;;  %s502_s15 = sand.u32 (%p2925_p5), 1, %s2782_s23  }
  0x4c   : > { %s2274_s30 = sshll.u32 (%p2925_p5), %s2786_s24, 4  ;;  %s2220_s27 = sshll.u32 (%p2925_p5), %s502_s15, 7 }
  0x4d   : > { %s3573_s29 = sld [smem:[#allocation22_spill]] (%p2925_p5)  ;;  %s504_s18 = scalar_lea.vmem (%p2925_p5), [#allocation2], %s2220_s27 }
  0x53   : > { %s2990_s2 = scalar_lea.vmem %s3573_s29, %s2274_s30 }
  0x54   : > { %v520_v0 = vld [vmem:[%s2990_s2] sm:$0xff]  ;;  %v522_v1 = vld [vmem:[%s2990_s2 + $0x8] sm:$0xff] }
  0x55   : > { %v524_v2 = vld [vmem:[%s2990_s2 + $0x20] sm:$0xff]  ;;  %521 = vst [vmem:[%s504_s18] sm:$0xff] %v520_v0  ;;  %523 = vst [vmem:[%s504_s18 + $0x8] sm:$0xff] %v522_v1  ;;  %v526_v3 = vld [vmem:[%s2990_s2 + $0x28] sm:$0xff] }
  0x56   : > { %525 = vst [vmem:[%s504_s18 + $0x10] sm:$0xff] %v524_v2  ;;  %v528_v4 = vld [vmem:[%s2990_s2 + $0x40] sm:$0xff]  ;;  %v530_v5 = vld [vmem:[%s2990_s2 + $0x48] sm:$0xff]  ;;  %527 = vst [vmem:[%s504_s18 + $0x18] sm:$0xff] %v526_v3 }
  0x57   : > { %529 = vst [vmem:[%s504_s18 + $0x20] sm:$0xff] %v528_v4  ;;  %531 = vst [vmem:[%s504_s18 + $0x28] sm:$0xff] %v530_v5  ;;  %v532_v6 = vld [vmem:[%s2990_s2 + $0x60] sm:$0xff]  ;;  %v534_v7 = vld [vmem:[%s2990_s2 + $0x68] sm:$0xff] }
  0x58   : > { %v536_v8 = vld [vmem:[%s2990_s2 + $0x80] sm:$0xff]  ;;  %533 = vst [vmem:[%s504_s18 + $0x30] sm:$0xff] %v532_v6  ;;  %535 = vst [vmem:[%s504_s18 + $0x38] sm:$0xff] %v534_v7  ;;  %v538_v9 = vld [vmem:[%s2990_s2 + $0x88] sm:$0xff] }
  0x59   : > { %537 = vst [vmem:[%s504_s18 + $0x40] sm:$0xff] %v536_v8  ;;  %v540_v10 = vld [vmem:[%s2990_s2 + $0xa0] sm:$0xff]  ;;  %v542_v11 = vld [vmem:[%s2990_s2 + $0xa8] sm:$0xff]  ;;  %539 = vst [vmem:[%s504_s18 + $0x48] sm:$0xff] %v538_v9 }
  0x5a   : > { %541 = vst [vmem:[%s504_s18 + $0x50] sm:$0xff] %v540_v10  ;;  %543 = vst [vmem:[%s504_s18 + $0x58] sm:$0xff] %v542_v11  ;;  %v544_v12 = vld [vmem:[%s2990_s2 + $0xc0] sm:$0xff]  ;;  %v546_v13 = vld [vmem:[%s2990_s2 + $0xc8] sm:$0xff] }
  0x5b   : > { %v548_v14 = vld [vmem:[%s2990_s2 + $0xe0] sm:$0xff]  ;;  %545 = vst [vmem:[%s504_s18 + $0x60] sm:$0xff] %v544_v12  ;;  %547 = vst [vmem:[%s504_s18 + $0x68] sm:$0xff] %v546_v13  ;;  %v550_v15 = vld [vmem:[%s2990_s2 + $0xe8] sm:$0xff] }
  0x5c   : > { %549 = vst [vmem:[%s504_s18 + $0x70] sm:$0xff] %v548_v14  ;;  %551 = vst [vmem:[%s504_s18 + $0x78] sm:$0xff] %v550_v15 }
  0x5d PF: > { %557 = sbr.rel (!%p2925_p5) target bundleno = 105 (0x69), region = 91  ;;  %s559_s20 = sand.u32 (%p2925_p5), 1, %s2782_s23  }
  0x5e   : > { %s2275_s26 = sshll.u32 (%p2925_p5), %s2786_s24, 4  ;;  %s2223_s14 = sshll.u32 (%p2925_p5), %s559_s20, 5 }
  0x5f   : > { %s3574_s1 = sld [smem:[#allocation23_spill]] (%p2925_p5)  ;;  %s561_s27 = scalar_lea.vmem (%p2925_p5), [#allocation3], %s2223_s14 }
  0x65   : > { %s564_s30 = scalar_lea.vmem %s3574_s1, %s2275_s26 }
  0x66   : > { %v577_v16 = vld [vmem:[%s564_s30] sm:$0xff]  ;;  %v579_v17 = vld [vmem:[%s564_s30 + $0x8] sm:$0xff] }
  0x67   : > { %v581_v18 = vld [vmem:[%s564_s30 + $0x20] sm:$0xff]  ;;  %578 = vst [vmem:[%s561_s27] sm:$0xff] %v577_v16  ;;  %580 = vst [vmem:[%s561_s27 + $0x8] sm:$0xff] %v579_v17  ;;  %v583_v19 = vld [vmem:[%s564_s30 + $0x28] sm:$0xff] }
  0x68   : > { %582 = vst [vmem:[%s561_s27 + $0x10] sm:$0xff] %v581_v18  ;;  %584 = vst [vmem:[%s561_s27 + $0x18] sm:$0xff] %v583_v19 }
  0x69 PF: > { %p3575_p5 = scmp.ne.s32.totalorder %s3569_s19, 0 }
  0x6a   : > { %s3018_s2 = sand.u32 (!%p3575_p5), 1, %s2778_s22   ;;  %p3576_p12 = scmp.eq.s32.totalorder (!%p3575_p5), %s2907_s25, 0 }
  0x6b   : > { %593 = sbr.rel (%p3575_p5) target bundleno = 1695 (0x69f), region = 114  ;;  %s3550_s0 = sshll.u32 (!%p3575_p5), %s3018_s2, 7 }
  0x6c   : > { %s3022_s21 = sshll.u32 (!%p3575_p5), %s3018_s2, 5  ;;  %s3026_s16 = scalar_lea.vmem (!%p3575_p5), [#allocation2], %s3550_s0 }
  0x6d   : > { %s3029_s29 = scalar_lea.vmem (!%p3575_p5), [#allocation3], %s3022_s21 }
  0x70   : > { %2757 = dma.done.wait (%p3576_p12), [#allocation5], 512   ;;  %p3577_p0 = pmov %p3576_p12 }
  0x72   : > { %2759 = vsyncadd (%p3577_p0), [#allocation5], 4294966784  ;;  %p3578_p1 = pmov %p3577_p0 }
  0x73   : > { %p3579_p3 = pmov %p3577_p0 }
  0x74   : > { %2761 = dma.done.wait (%p3578_p1), [#allocation8], 1024  }
  0x75   : > { %2763 = vsyncadd (%p3579_p3), [#allocation8], 4294966272  ;;  %v2793_v20 = vmov 0.0   ;;  %v2794_v21 = vmov 0   ;;  %v698_v22 = vld [vmem:[%s3026_s16 + $0x78] sm:$0xff]  ;;  %v697_v23 = vld [vmem:[%s3026_s16 + $0x70] sm:$0xff] }
  0x76   : > { %804 = vmatprep.mubr.f32.mxu0 %v2793_v20  ;;  %2374 = vset.pattern.permute.xlu0 %v2794_v21  ;;  %v696_v24 = vld [vmem:[%s3026_s16 + $0x68] sm:$0xff]  ;;  %v695_v25 = vld [vmem:[%s3026_s16 + $0x60] sm:$0xff]  ;;  %v694_v26 = vld [vmem:[%s3026_s16 + $0x58] sm:$0xff]  ;;  %s3580_s3 = sld [smem:[#allocation25_spill]]  ;;  %vm727_vm0 = vcmask 523264   ;;  %vm929_vm1 = vcmask 261120  }
  0x77   : > { %2375 = vset.pattern.permute.xlu1 %v2794_v21  ;;  %1006 = vmatprep.mubr.f32.mxu1 %v2793_v20  ;;  %v693_v27 = vld [vmem:[%s3026_s16 + $0x50] sm:$0xff]  ;;  %v692_v28 = vld [vmem:[%s3026_s16 + $0x48] sm:$0xff]  ;;  %v691_v29 = vld [vmem:[%s3026_s16 + $0x40] sm:$0xff]  ;;  %s3581_s5 = sld [smem:[#allocation27_spill]]  ;;  %s3234_s28 = scalar_lea.vmem [#allocation10], %s3022_s21  ;;  %vm1308_vm2 = vcmask 130048  }
  0x78   : > { %756 = vmatprep.subr.mxu0 %v698_v22  ;;  %v690_v30 = vld [vmem:[%s3026_s16 + $0x38] sm:$0xff]  ;;  %v689_v32 = vld [vmem:[%s3026_s16 + $0x30] sm:$0xff]  ;;  %v688_v34 = vld [vmem:[%s3026_s16 + $0x28] sm:$0xff]  ;;  %s3243_s15 = scalar_lea.vmem [#allocation11], %s3022_s21  ;;  %s2004_s19 = sshll.u32 %s3234_s28, 4  ;;  %s3377_s19 = int_to_ptr.vmem [resolvable:$true] %s2004_s19 }
  0x79   : > { %757 = vmatpush1.msra.mxu0 %v697_v23  ;;  %v687_v36 = vld [vmem:[%s3026_s16 + $0x20] sm:$0xff]  ;;  %v686_v38 = vld [vmem:[%s3026_s16 + $0x18] sm:$0xff]  ;;  %v685_v39 = vld [vmem:[%s3026_s16 + $0x10] sm:$0xff]  ;;  %s2020_s27 = sshll.u32 %s3243_s15, 4  ;;  %s1985_s18 = sand.u32 1, %s2907_s25   ;;  %s3371_s27 = int_to_ptr.vmem [resolvable:$true] %s2020_s27 }
  0x7a   : > { %758 = vmatprep.subr.mxu0 %v696_v24  ;;  %v684_v40 = vld [vmem:[%s3026_s16 + $0x8] sm:$0xff]  ;;  %v683_v42 = vld [vmem:[%s3026_s16] sm:$0xff]  ;;  %v1110_v48 = vld [vmem:[%s3529_s7 + $0x18] sm:$0xff]  ;;  %s3375_s20 = sshll.u32 %s2907_s25, 8  ;;  %s3582_s21 = sld [smem:[#allocation29_spill]] }
  0x7b   : > { %759 = vmatpush1.msra.mxu0 %v695_v25  ;;  %v699_v44 = vld [vmem:[#allocation4] sm:$0xff]  ;;  %v700_v47 = vld [vmem:[#allocation4 + $0x8] sm:$0xff]  ;;  %v701_v50 = vld [vmem:[#allocation4 + $0x10] sm:$0xff]  ;;  %s3385_s30 = scalar_lea.sflag [#allocation12], %s1985_s18  ;;  %p3584_p4 = scmp.ne.s32.totalorder %s3566_s17, 0 }
  0x7c   : > { %760 = vmatprep.subr.mxu0 %v694_v26  ;;  %v706_v31 = vld [vmem:[%s3580_s3 + $0x18] sm:$0xff]  ;;  %v704_v33 = vld [vmem:[%s3580_s3 + $0x8] sm:$0xff]  ;;  %v705_v35 = vld [vmem:[%s3580_s3 + $0x10] sm:$0xff] }
  0x7d   : > { %761 = vmatpush1.msra.mxu0 %v693_v27  ;;  %724 = vperm.xlu0 %2374, %v706_v31   ;;  %v703_v37 = vld [vmem:[%s3580_s3] sm:$0xff]  ;;  %v908_v41 = vld [vmem:[%s3581_s5 + $0x18] sm:$0xff]  ;;  %v907_v43 = vld [vmem:[%s3581_s5 + $0x10] sm:$0xff] }
  0x7e   : > { %762 = vmatprep.subr.mxu0 %v692_v28  ;;  %714 = vperm.xlu1 %2375, %v704_v33   ;;  %v906_v45 = vld [vmem:[%s3581_s5 + $0x8] sm:$0xff]  ;;  %v905_v46 = vld [vmem:[%s3581_s5] sm:$0xff]  ;;  %v1109_v51 = vld [vmem:[%s3529_s7 + $0x10] sm:$0xff] }
  0x7f   : > { %763 = vmatpush1.msra.mxu0 %v691_v29  ;;  %v1108_v49 = vld [vmem:[%s3529_s7 + $0x8] sm:$0xff]  ;;  %v1107_v52 = vld [vmem:[%s3529_s7] sm:$0xff]  ;;  %v702_v53 = vld [vmem:[#allocation4 + $0x18] sm:$0xff] }
  0x80   : > { %764 = vmatprep.subr.mxu0 %v690_v30  ;;  %v1287_v54 = vld [vmem:[%s3531_s9 + $0x18] sm:$0xff]  ;;  %v1286_v55 = vld [vmem:[%s3531_s9 + $0x10] sm:$0xff]  ;;  %v1285_v56 = vld [vmem:[%s3531_s9 + $0x8] sm:$0xff]  ;;  %s3383_s16 = scalar_lea.hbm %s3582_s21, %s3375_s20 }
  0x81   : > { %765 = vmatpush1.msra.mxu0 %v689_v32  ;;  %719 = vperm.xlu0 %2374, %v705_v35   ;;  %v1284_v57 = vld [vmem:[%s3531_s9] sm:$0xff]  ;;  %v1489_v58 = vld [vmem:[%s3533_s11 + $0x18] sm:$0xff]  ;;  %v1488_v59 = vld [vmem:[%s3533_s11 + $0x10] sm:$0xff] }
  0x82   : > { %766 = vmatprep.subr.mxu0 %v688_v34  ;;  %709 = vperm.xlu1 %2375, %v703_v37   ;;  %v1487_v60 = vld [vmem:[%s3533_s11 + $0x8] sm:$0xff]  ;;  %v1486_v61 = vld [vmem:[%s3533_s11] sm:$0xff]  ;;  %v1693_v0 = vld [vmem:[%s3535_s13 + $0x10] sm:$0xff] }
  0x83   : > { %767 = vmatpush1.msra.mxu0 %v687_v36  ;;  %v1691_v62 = vld [vmem:[%s3535_s13] sm:$0xff]  ;;  %v1692_v63 = vld [vmem:[%s3535_s13 + $0x8] sm:$0xff]  ;;  %v1694_v1 = vld [vmem:[%s3535_s13 + $0x18] sm:$0xff] }
  0x84   : > { %768 = vmatprep.subr.mxu0 %v686_v38  ;;  %v1695_v2 = vld [vmem:[%s3535_s13 + $0x20] sm:$0xff]  ;;  %v1696_v3 = vld [vmem:[%s3535_s13 + $0x28] sm:$0xff]  ;;  %v1697_v4 = vld [vmem:[%s3535_s13 + $0x30] sm:$0xff] }
  0x85   : > { %769 = vmatpush1.msra.mxu0 %v685_v39  ;;  %926 = vperm.xlu0 %2374, %v908_v41   ;;  %v1698_v5 = vld [vmem:[%s3535_s13 + $0x38] sm:$0xff] }
  0x86   : > { %770 = vmatprep.subr.mxu0 %v684_v40  ;;  %921 = vperm.xlu1 %2375, %v907_v43  }
  0x87   : > { %771 = vmatpush1.msra.mxu0 %v683_v42 }
  0x88   : > { %2235 = vmatmul.mubr.msk.f32.vlgmr.msra.gmra.mxu0 %vm727_vm0, %v699_v44 }
  0x89   : > { %810 = vmatprep.mubr.f32.mxu0 %v2793_v20  ;;  %916 = vperm.xlu0 %2374, %v906_v45  }
  0x8a   : > { %911 = vperm.xlu1 %2375, %v905_v46  }
  0x8c   : > { %2236 = vmatmul.mubr.msk.f32.gmra.mxu0 %vm727_vm0, %v700_v47 }
  0x8d   : > { %816 = vmatprep.mubr.f32.mxu0 %v2793_v20  ;;  %1128 = vperm.xlu0 %2374, %v1110_v48  }
  0x8e   : > { %1118 = vperm.xlu1 %2375, %v1108_v49  }
  0x90   : > { %2237 = vmatmul.mubr.msk.f32.gmra.mxu0 %vm727_vm0, %v701_v50 }
  0x91   : > { %822 = vmatprep.mubr.f32.mxu0 %v2793_v20  ;;  %1123 = vperm.xlu0 %2374, %v1109_v51  }
  0x92   : > { %1113 = vperm.xlu1 %2375, %v1107_v52  }
  0x94   : > { %2238 = vmatmul.mubr.msk.f32.gmra.mxu0 %vm727_vm0, %v702_v53 }
  0x95   : > { %1385 = vmatprep.mubr.f32.mxu0 %v2793_v20  ;;  %1305 = vperm.xlu0 %2374, %v1287_v54  }
  0x96   : > { %1300 = vperm.xlu1 %2375, %v1286_v55  }
  0x99   : > { %1295 = vperm.xlu0 %2374, %v1285_v56  }
  0x9a   : > { %1290 = vperm.xlu1 %2375, %v1284_v57  }
  0x9d   : > { %1507 = vperm.xlu0 %2374, %v1489_v58  }
  0x9e   : > { %1502 = vperm.xlu1 %2375, %v1488_v59  }
  0xa1   : > { %1497 = vperm.xlu0 %2374, %v1487_v60  }
  0xa2   : > { %1492 = vperm.xlu1 %2375, %v1486_v61  }
  0xa5   : > { %1701 = vperm.xlu0 %2374, %v1691_v62  }
  0xa6   : > { %1706 = vperm.xlu1 %2375, %v1692_v63  }
  0xa9   : > { %1711 = vperm.xlu0 %2374, %v1693_v0  }
  0xaa   : > { %1716 = vperm.xlu1 %2375, %v1694_v1  }
  0xad   : > { %1721 = vperm.xlu0 %2374, %v1695_v2  }
  0xae   : > { %1726 = vperm.xlu1 %2375, %v1696_v3  }
  0xb1   : > { %1731 = vperm.xlu0 %2374, %v1697_v4  }
  0xb2   : > { %1736 = vperm.xlu1 %2375, %v1698_v5  }
  0xf8   : > { %v725_v8 = vpop.permute.xlu0 %724 }
  0xf9   : > { %v715_v6 = vpop.permute.xlu1 %714 }
  0xfc   : > { %v720_v18 = vpop.permute.xlu0 %719 }
  0xfd   : > { %v710_v9 = vpop.permute.xlu1 %709 }
 0x148   : > { %v806_v7 = vpop.f32.mrf.mxu0 }
 0x149   : > { %v3154_v15 = vadd.f32 %v806_v7, %v710_v9 }
 0x14a   : > { %v808_v10 = vpop.f32.mrf.mxu0 }
 0x14b   : > { %v3149_v11 = vadd.f32 %v808_v10, %v710_v9  ;;  %v837_v24 = vand.u32 2147483647, %v3154_v15 }
 0x14c   : > { %v812_v12 = vpop.f32.mrf.mxu0 }
 0x14d   : > { %v838_v13 = vand.u32 2147483647, %v3149_v11  ;;  %v3152_v14 = vadd.f32 %v812_v12, %v715_v6  ;;  %v845_v35 = vsub.f32 0.0, %v837_v24 }
 0x14e   : > { %v814_v16 = vpop.f32.mrf.mxu0 }
 0x14f   : > { %v839_v17 = vand.u32 2147483647, %v3152_v14  ;;  %v3157_v19 = vadd.f32 %v814_v16, %v715_v6  ;;  %v846_v22 = vsub.f32 0.0, %v838_v13  ;;  %v853_v46 = vmul.f32 1.442695, %v845_v35 }
 0x150   : > { %v818_v21 = vpop.f32.mrf.mxu0 }
 0x151   : > { %v3159_v23 = vadd.f32 %v818_v21, %v720_v18  ;;  %v840_v25 = vand.u32 2147483647, %v3157_v19  ;;  %v847_v27 = vsub.f32 0.0, %v839_v17  ;;  %v855_v32 = vmul.f32 1.442695, %v846_v22 }
 0x152   : > { %v820_v26 = vpop.f32.mrf.mxu0 }
 0x153   : > { %v841_v28 = vand.u32 2147483647, %v3159_v23  ;;  %v848_v29 = vsub.f32 0.0, %v840_v25  ;;  %v3164_v30 = vadd.f32 %v820_v26, %v720_v18  ;;  %v857_v39 = vmul.f32 1.442695, %v847_v27 }
 0x154   : > { %v824_v31 = vpop.f32.mrf.mxu0  ;;  %v833_v26 = vmax.f32 %v3159_v23, 0.0 }
 0x155   : > { %v849_v33 = vsub.f32 0.0, %v841_v28  ;;  %v3166_v34 = vadd.f32 %v824_v31, %v725_v8  ;;  %v859_v36 = vmul.f32 1.442695, %v848_v29  ;;  %v842_v37 = vand.u32 2147483647, %v3164_v30 }
 0x156   : > { %v826_v38 = vpop.f32.mrf.mxu0  ;;  %v834_v22 = vmax.f32 %v3164_v30, 0.0  ;;  %v832_v29 = vmax.f32 %v3157_v19, 0.0 }
 0x157   : > { %v861_v40 = vmul.f32 1.442695, %v849_v33  ;;  %v843_v41 = vand.u32 2147483647, %v3166_v34  ;;  %v827_v42 = vadd.f32 %v826_v38, %v725_v8  ;;  %2376 = vpow2.f32 %v859_v36 }
 0x158   : > { %v850_v43 = vsub.f32 0.0, %v842_v37  ;;  %2378 = vpow2.f32 %v855_v32  ;;  %v835_v17 = vmax.f32 %v3166_v34, 0.0  ;;  %v831_v33 = vmax.f32 %v3152_v14, 0.0  ;;  %v902_v14 = vld [vmem:[#allocation7 + $0x8] sm:$0xff] }
 0x159   : > { %v851_v44 = vsub.f32 0.0, %v843_v41  ;;  %v844_v45 = vand.u32 2147483647, %v827_v42  ;;  %2380 = vpow2.f32 %v861_v40  ;;  %v836_v10 = vmax.f32 %v827_v42, 0.0  ;;  %v922_v40 = vpop.permute.xlu1 %921  ;;  %v927_v41 = vpop.permute.xlu0 %926 }
 0x15a   : > { %v863_v47 = vmul.f32 1.442695, %v850_v43  ;;  %2382 = vpow2.f32 %v857_v39  ;;  %v830_v36 = vmax.f32 %v3149_v11, 0.0  ;;  %v829_v37 = vmax.f32 %v3154_v15, 0.0  ;;  %v901_v39 = vld [vmem:[#allocation7] sm:$0xff]  ;;  %v903_v11 = vld [vmem:[#allocation7 + $0x10] sm:$0xff] }
 0x15b   : > { %v865_v48 = vmul.f32 1.442695, %v851_v44  ;;  %v852_v49 = vsub.f32 0.0, %v844_v45  ;;  %v904_v15 = vld [vmem:[#allocation7 + $0x18] sm:$0xff] }
 0x15c   : > { %2384 = vpow2.f32 %v863_v47 }
 0x15d   : > { %2386 = vpow2.f32 %v865_v48  ;;  %v867_v50 = vmul.f32 1.442695, %v852_v49  ;;  %v912_v43 = vpop.permute.xlu1 %911 }
 0x15e   : > { %2388 = vpow2.f32 %v853_v46  ;;  %v917_v46 = vpop.permute.xlu0 %916 }
 0x15f   : > { %2390 = vpow2.f32 %v867_v50 }
 0x164   : > { %v2377_v51 = vpop.eup %2376 }
 0x165   : > { %v2379_v52 = vpop.eup %2378  ;;  %v872_v54 = vadd.f32 1.0, %v2377_v51 }
 0x166   : > { %v2381_v53 = vpop.eup %2380  ;;  %v870_v0 = vadd.f32 1.0, %v2379_v52 }
 0x167   : > { %v2383_v55 = vpop.eup %2382  ;;  %v873_v58 = vadd.f32 1.0, %v2381_v53  ;;  %2392 = vlog2.f32 %v872_v54 }
 0x168   : > { %v871_v63 = vadd.f32 1.0, %v2383_v55 }
 0x169   : > { %v2385_v56 = vpop.eup %2384 }
 0x16a   : > { %v2387_v57 = vpop.eup %2386  ;;  %v874_v59 = vadd.f32 1.0, %v2385_v56 }
 0x16b   : > { %v2389_v60 = vpop.eup %2388  ;;  %v875_v61 = vadd.f32 1.0, %v2387_v57 }
 0x16c   : > { %v2391_v62 = vpop.eup %2390  ;;  %2394 = vlog2.f32 %v874_v59  ;;  %v869_v2 = vadd.f32 1.0, %v2389_v60 }
 0x16d   : > { %v876_v1 = vadd.f32 1.0, %v2391_v62  ;;  %2396 = vlog2.f32 %v875_v61 }
 0x16e   : > { %2398 = vlog2.f32 %v873_v58 }
 0x16f   : > { %2400 = vlog2.f32 %v876_v1 }
 0x170   : > { %2402 = vlog2.f32 %v871_v63 }
 0x171   : > { %2404 = vlog2.f32 %v870_v0 }
 0x172   : > { %2406 = vlog2.f32 %v869_v2 }
 0x174   : > { %v2393_v3 = vpop.eup %2392 }
 0x175   : > { %v884_v25 = vmul.f32 0.6931472, %v2393_v3 }
 0x177   : > { %v896_v30 = vadd.f32 %v884_v25, %v832_v29 }
 0x179   : > { %v2395_v4 = vpop.eup %2394 }
 0x17a   : > { %v2397_v5 = vpop.eup %2396  ;;  %v888_v13 = vmul.f32 0.6931472, %v2395_v4 }
 0x17b   : > { %v2399_v6 = vpop.eup %2398  ;;  %v890_v8 = vmul.f32 0.6931472, %v2397_v5 }
 0x17c   : > { %v2401_v7 = vpop.eup %2400  ;;  %v886_v18 = vmul.f32 0.6931472, %v2399_v6  ;;  %v898_v31 = vadd.f32 %v888_v13, %v834_v22 }
 0x17d   : > { %v2403_v9 = vpop.eup %2402  ;;  %v892_v12 = vmul.f32 0.6931472, %v2401_v7  ;;  %v899_v27 = vadd.f32 %v890_v8, %v835_v17 }
 0x17e   : > { %v2405_v16 = vpop.eup %2404  ;;  %v882_v28 = vmul.f32 0.6931472, %v2403_v9  ;;  %v897_v35 = vadd.f32 %v886_v18, %v833_v26 }
 0x17f   : > { %v2407_v21 = vpop.eup %2406  ;;  %v900_v24 = vadd.f32 %v892_v12, %v836_v10  ;;  %v880_v32 = vmul.f32 0.6931472, %v2405_v16 }
 0x180   : > { %v878_v34 = vmul.f32 0.6931472, %v2407_v21  ;;  %v895_v23 = vadd.f32 %v882_v28, %v831_v33 }
 0x181   : > { %966 = vmatprep.subr.mxu1 %v900_v24  ;;  %v894_v38 = vadd.f32 %v880_v32, %v830_v36 }
 0x182   : > { %967 = vmatpush1.msra.mxu1 %v899_v27  ;;  %v893_v19 = vadd.f32 %v878_v34, %v829_v37 }
 0x183   : > { %968 = vmatprep.subr.mxu1 %v898_v31 }
 0x184   : > { %969 = vmatpush1.msra.mxu1 %v897_v35 }
 0x185   : > { %970 = vmatprep.subr.mxu1 %v896_v30 }
 0x186   : > { %971 = vmatpush1.msra.mxu1 %v895_v23 }
 0x187   : > { %972 = vmatprep.subr.mxu1 %v894_v38 }
 0x188   : > { %973 = vmatpush1.msra.mxu1 %v893_v19 }
 0x189   : > { %2239 = vmatmul.mubr.msk.f32.vlgmr.msra.gmra.mxu1 %vm929_vm1, %v901_v39 }
 0x18a   : > { %1012 = vmatprep.mubr.f32.mxu1 %v2793_v20 }
 0x18d   : > { %2240 = vmatmul.mubr.msk.f32.gmra.mxu1 %vm929_vm1, %v902_v14 }
 0x18e   : > { %1018 = vmatprep.mubr.f32.mxu1 %v2793_v20 }
 0x191   : > { %2241 = vmatmul.mubr.msk.f32.gmra.mxu1 %vm929_vm1, %v903_v11 }
 0x192   : > { %1024 = vmatprep.mubr.f32.mxu1 %v2793_v20 }
 0x195   : > { %2242 = vmatmul.mubr.msk.f32.gmra.mxu1 %vm929_vm1, %v904_v15 }
 0x196   : > { %1207 = vmatprep.mubr.f32.mxu1 %v2793_v20 }
 0x249   : > { %v1008_v42 = vpop.f32.mrf.mxu1 }
 0x24a   : > { %v3190_v50 = vadd.f32 %v1008_v42, %v912_v43 }
 0x24b   : > { %v1010_v44 = vpop.f32.mrf.mxu1 }
 0x24c   : > { %v3185_v45 = vadd.f32 %v1010_v44, %v912_v43  ;;  %v1039_v57 = vand.u32 2147483647, %v3190_v50 }
 0x24d   : > { %v1014_v47 = vpop.f32.mrf.mxu1 }
 0x24e   : > { %v1040_v48 = vand.u32 2147483647, %v3185_v45  ;;  %v3188_v49 = vadd.f32 %v1014_v47, %v917_v46  ;;  %v1047_v4 = vsub.f32 0.0, %v1039_v57 }
 0x24f   : > { %v1016_v51 = vpop.f32.mrf.mxu1 }
 0x250   : > { %v1041_v52 = vand.u32 2147483647, %v3188_v49  ;;  %v3193_v53 = vadd.f32 %v1016_v51, %v917_v46  ;;  %v1048_v55 = vsub.f32 0.0, %v1040_v48  ;;  %v1055_v18 = vmul.f32 1.442695, %v1047_v4 }
 0x251   : > { %v1020_v54 = vpop.f32.mrf.mxu1  ;;  %v1033_v4 = vmax.f32 %v3188_v49, 0.0  ;;  %v1105_v49 = vld [vmem:[%s3528_s6 + $0x10] sm:$0xff] }
 0x252   : > { %v3195_v56 = vadd.f32 %v1020_v54, %v922_v40  ;;  %v1042_v58 = vand.u32 2147483647, %v3193_v53  ;;  %v1049_v60 = vsub.f32 0.0, %v1041_v52  ;;  %v1057_v1 = vmul.f32 1.442695, %v1048_v55 }
 0x253   : > { %v1022_v59 = vpop.f32.mrf.mxu1 }
 0x254   : > { %v1043_v61 = vand.u32 2147483647, %v3195_v56  ;;  %v1050_v62 = vsub.f32 0.0, %v1042_v58  ;;  %v3200_v63 = vadd.f32 %v1022_v59, %v922_v40  ;;  %v1059_v8 = vmul.f32 1.442695, %v1049_v60 }
 0x255   : > { %v1026_v0 = vpop.f32.mrf.mxu1  ;;  %v1035_v60 = vmax.f32 %v3195_v56, 0.0 }
 0x256   : > { %v1051_v2 = vsub.f32 0.0, %v1043_v61  ;;  %v3202_v3 = vadd.f32 %v1026_v0, %v927_v41  ;;  %v1061_v5 = vmul.f32 1.442695, %v1050_v62  ;;  %v1044_v6 = vand.u32 2147483647, %v3200_v63 }
 0x257   : > { %v1028_v7 = vpop.f32.mrf.mxu1  ;;  %v1036_v55 = vmax.f32 %v3200_v63, 0.0  ;;  %v1034_v62 = vmax.f32 %v3193_v53, 0.0  ;;  %v1103_v53 = vld [vmem:[%s3528_s6] sm:$0xff] }
 0x258   : > { %v1063_v9 = vmul.f32 1.442695, %v1051_v2  ;;  %v1045_v10 = vand.u32 2147483647, %v3202_v3  ;;  %v1029_v12 = vadd.f32 %v1028_v7, %v927_v41  ;;  %2408 = vpow2.f32 %v1061_v5 }
 0x259   : > { %v1052_v13 = vsub.f32 0.0, %v1044_v6  ;;  %2410 = vpow2.f32 %v1057_v1  ;;  %v1037_v52 = vmax.f32 %v3202_v3, 0.0  ;;  %v1032_v3 = vmax.f32 %v3185_v45, 0.0  ;;  %v1104_v45 = vld [vmem:[%s3528_s6 + $0x8] sm:$0xff] }
 0x25a   : > { %v1053_v16 = vsub.f32 0.0, %v1045_v10  ;;  %v1046_v17 = vand.u32 2147483647, %v1029_v12  ;;  %2412 = vpow2.f32 %v1063_v9  ;;  %v1038_v44 = vmax.f32 %v1029_v12, 0.0  ;;  %v1119_v9 = vpop.permute.xlu1 %1118 }
 0x25b   : > { %v1065_v21 = vmul.f32 1.442695, %v1052_v13  ;;  %2414 = vpow2.f32 %v1059_v8  ;;  %v1031_v6 = vmax.f32 %v3190_v50, 0.0  ;;  %v1106_v50 = vld [vmem:[%s3528_s6 + $0x18] sm:$0xff] }
 0x25c   : > { %v1067_v22 = vmul.f32 1.442695, %v1053_v16  ;;  %v1054_v24 = vsub.f32 0.0, %v1046_v17  ;;  %v1129_v16 = vpop.permute.xlu0 %1128 }
 0x25d   : > { %2416 = vpow2.f32 %v1065_v21 }
 0x25e   : > { %2418 = vpow2.f32 %v1067_v22  ;;  %v1069_v25 = vmul.f32 1.442695, %v1054_v24  ;;  %v1114_v10 = vpop.permute.xlu1 %1113 }
 0x25f   : > { %2420 = vpow2.f32 %v1055_v18 }
 0x260   : > { %2422 = vpow2.f32 %v1069_v25 }
 0x265   : > { %v2409_v26 = vpop.eup %2408 }
 0x266   : > { %v2411_v27 = vpop.eup %2410  ;;  %v1074_v29 = vadd.f32 1.0, %v2409_v26  ;;  %v1124_v26 = vpop.permute.xlu0 %1123 }
 0x267   : > { %v2413_v28 = vpop.eup %2412  ;;  %v1072_v38 = vadd.f32 1.0, %v2411_v27 }
 0x268   : > { %v2415_v31 = vpop.eup %2414  ;;  %v1075_v35 = vadd.f32 1.0, %v2413_v28  ;;  %2424 = vlog2.f32 %v1074_v29  ;;  %v1232_v28 = vld [vmem:[%s3029_s29] sm:$0xff] }
 0x269   : > { %v1073_v23 = vadd.f32 1.0, %v2415_v31 }
 0x26a   : > { %v2417_v32 = vpop.eup %2416 }
 0x26b   : > { %v2419_v33 = vpop.eup %2418  ;;  %v1076_v34 = vadd.f32 1.0, %v2417_v32  ;;  %v1233_v32 = vld [vmem:[%s3029_s29 + $0x8] sm:$0xff] }
 0x26c   : > { %v2421_v36 = vpop.eup %2420  ;;  %v1077_v30 = vadd.f32 1.0, %v2419_v33 }
 0x26d   : > { %v2423_v37 = vpop.eup %2422  ;;  %2426 = vlog2.f32 %v1076_v34  ;;  %v1071_v39 = vadd.f32 1.0, %v2421_v36  ;;  %v1234_v36 = vld [vmem:[%s3029_s29 + $0x10] sm:$0xff] }
 0x26e   : > { %2428 = vlog2.f32 %v1077_v30  ;;  %v1078_v19 = vadd.f32 1.0, %v2423_v37 }
 0x26f   : > { %2430 = vlog2.f32 %v1075_v35 }
 0x270   : > { %2432 = vlog2.f32 %v1078_v19 }
 0x271   : > { %2434 = vlog2.f32 %v1073_v23 }
 0x272   : > { %2436 = vlog2.f32 %v1072_v38 }
 0x273   : > { %2438 = vlog2.f32 %v1071_v39 }
 0x275   : > { %v2425_v14 = vpop.eup %2424 }
 0x276   : > { %v1086_v58 = vmul.f32 0.6931472, %v2425_v14 }
 0x278   : > { %v1098_v63 = vadd.f32 %v1086_v58, %v1034_v62 }
 0x27a   : > { %v2427_v11 = vpop.eup %2426 }
 0x27b   : > { %v2429_v15 = vpop.eup %2428  ;;  %v1090_v47 = vmul.f32 0.6931472, %v2427_v11  ;;  %v1235_v11 = vld [vmem:[%s3029_s29 + $0x18] sm:$0xff]  ;;  %s3583_s29 = smov %s3582_s21 }
 0x27c   : > { %v2431_v40 = vpop.eup %2430  ;;  %v1092_v42 = vmul.f32 0.6931472, %v2429_v15 }
 0x27d   : > { %v2433_v41 = vpop.eup %2432  ;;  %v1088_v51 = vmul.f32 0.6931472, %v2431_v40  ;;  %v1100_v0 = vadd.f32 %v1090_v47, %v1036_v55 }
 0x27e   : > { %v2435_v43 = vpop.eup %2434  ;;  %v1094_v46 = vmul.f32 0.6931472, %v2433_v41  ;;  %v1101_v61 = vadd.f32 %v1092_v42, %v1037_v52 }
 0x27f   : > { %v2437_v48 = vpop.eup %2436  ;;  %v1084_v59 = vmul.f32 0.6931472, %v2435_v43  ;;  %v1099_v5 = vadd.f32 %v1088_v51, %v1035_v60 }
 0x280   : > { %v2439_v54 = vpop.eup %2438  ;;  %v1102_v57 = vadd.f32 %v1094_v46, %v1038_v44  ;;  %v1082_v1 = vmul.f32 0.6931472, %v2437_v48 }
 0x281   : > { %v1080_v2 = vmul.f32 0.6931472, %v2439_v54  ;;  %v1097_v7 = vadd.f32 %v1084_v59, %v1033_v4 }
 0x282   : > { %1167 = vmatprep.subr.mxu1 %v1102_v57  ;;  %v1096_v56 = vadd.f32 %v1082_v1, %v1032_v3 }
 0x283   : > { %1168 = vmatpush1.msra.mxu1 %v1101_v61  ;;  %v1095_v8 = vadd.f32 %v1080_v2, %v1031_v6 }
 0x284   : > { %1169 = vmatprep.subr.mxu1 %v1100_v0 }
 0x285   : > { %1170 = vmatpush1.msra.mxu1 %v1099_v5 }
 0x286   : > { %1171 = vmatprep.subr.mxu1 %v1098_v63 }
 0x287   : > { %1172 = vmatpush1.msra.mxu1 %v1097_v7 }
 0x288   : > { %1173 = vmatprep.subr.mxu1 %v1096_v56 }
 0x289   : > { %1174 = vmatpush1.msra.mxu1 %v1095_v8 }
 0x28a   : > { %2243 = vmatmul.mubr.msk.f32.vlgmr.msra.gmra.mxu1 %vm929_vm1, %v1103_v53 }
 0x28b   : > { %1213 = vmatprep.mubr.f32.mxu1 %v2793_v20 }
 0x28e   : > { %2244 = vmatmul.mubr.msk.f32.gmra.mxu1 %vm929_vm1, %v1104_v45 }
 0x28f   : > { %1219 = vmatprep.mubr.f32.mxu1 %v2793_v20 }
 0x292   : > { %2245 = vmatmul.mubr.msk.f32.gmra.mxu1 %vm929_vm1, %v1105_v49 }
 0x293   : > { %1225 = vmatprep.mubr.f32.mxu1 %v2793_v20 }
 0x296   : > { %2246 = vmatmul.mubr.msk.f32.gmra.mxu1 %vm929_vm1, %v1106_v50 }
 0x297   : > { %1586 = vmatprep.mubr.f32.mxu1 %v2793_v20 }
 0x34a   : > { %v1209_v12 = vpop.f32.mrf.mxu1 }
 0x34b   : > { %v1210_v13 = vadd.f32 %v1209_v12, %v1114_v10 }
 0x34c   : > { %v1211_v17 = vpop.f32.mrf.mxu1 }
 0x34d   : > { %1956 = vst [vmem:[%s3234_s28] sm:$0xff] %v1210_v13  ;;  %v1212_v18 = vadd.f32 %v1211_v17, %v1114_v10  ;;  %v1280_v17 = vld [vmem:[%s3530_s8] sm:$0xff] }
 0x34e   : > { %v1215_v21 = vpop.f32.mrf.mxu1 }
 0x34f   : > { %1957 = vst [vmem:[%s3234_s28 + $0x8] sm:$0xff] %v1212_v18  ;;  %v1216_v22 = vadd.f32 %v1215_v21, %v1119_v9  ;;  %v1282_v21 = vld [vmem:[%s3530_s8 + $0x10] sm:$0xff] }
 0x350   : > { %v1217_v24 = vpop.f32.mrf.mxu1 }
 0x351   : > { %1958 = vst [vmem:[%s3234_s28 + $0x10] sm:$0xff] %v1216_v22  ;;  %v1218_v25 = vadd.f32 %v1217_v24, %v1119_v9  ;;  %v1301_v24 = vpop.permute.xlu1 %1300 }
 0x352   : > { %v1221_v27 = vpop.f32.mrf.mxu1 }
 0x353   : > { %1959 = vst [vmem:[%s3234_s28 + $0x18] sm:$0xff] %v1218_v25  ;;  %v1222_v29 = vadd.f32 %v1221_v27, %v1124_v26  ;;  %s2795_s28 = smov [#allocation11]  }
 0x354   : > { %v1223_v31 = vpop.f32.mrf.mxu1  ;;  %s2666_s0 = sshll.u32 %s2795_s28, 4  ;;  %s2667_s0 = int_to_ptr.vmem [resolvable:$false] %s2666_s0 }
 0x355   : > { %v1236_v33 = vmul.f32 %v1232_v28, %v1222_v29  ;;  %1960 = vst [vmem:[%s3243_s15] sm:$0xff] %v1222_v29  ;;  %v1224_v35 = vadd.f32 %v1223_v31, %v1124_v26  ;;  %v1291_v27 = vpop.permute.xlu1 %1290  ;;  %s2668_s25 = scalar_lea.vmem %s2667_s0, 1024  ;;  %p2669_p11 = scmp.lt.s32.totalorder %s3371_s27, %s2667_s0 }
 0x356   : > { %v1227_v34 = vpop.f32.mrf.mxu1 }
 0x357   : > { %v1240_v30 = vadd.f32 %v1236_v33, %v1210_v13  ;;  %v1237_v37 = vmul.f32 %v1233_v32, %v1224_v35  ;;  %1961 = vst [vmem:[%s3243_s15 + $0x8] sm:$0xff] %v1224_v35  ;;  %v1228_v23 = vadd.f32 %v1227_v34, %v1129_v16 }
 0x358   : > { %v1229_v38 = vpop.f32.mrf.mxu1 }
 0x359   : > { %v1248_v19 = vand.u32 2147483647, %v1240_v30  ;;  %v1241_v39 = vadd.f32 %v1237_v37, %v1212_v18  ;;  %v1238_v14 = vmul.f32 %v1234_v36, %v1228_v23  ;;  %1962 = vst [vmem:[%s3243_s15 + $0x10] sm:$0xff] %v1228_v23  ;;  %v1230_v15 = vadd.f32 %v1229_v38, %v1129_v16  ;;  %v1281_v18 = vld [vmem:[%s3530_s8 + $0x8] sm:$0xff] }
 0x35a   : > { %v1244_v10 = vmax.f32 %v1240_v30, 0.0 }
 0x35b   : > { %v1252_v40 = vsub.f32 0.0, %v1248_v19  ;;  %v1249_v41 = vand.u32 2147483647, %v1241_v39  ;;  %v1242_v42 = vadd.f32 %v1238_v14, %v1216_v22  ;;  %v1239_v43 = vmul.f32 %v1235_v11, %v1230_v15  ;;  %1963 = vst [vmem:[%s3243_s15 + $0x18] sm:$0xff] %v1230_v15  ;;  %v1283_v22 = vld [vmem:[%s3530_s8 + $0x18] sm:$0xff]  ;;  %s2662_s15 = scalar_lea.vmem %s3371_s27, 512 }
 0x35c   : > { %v1245_v9 = vmax.f32 %v1241_v39, 0.0  ;;  %p2663_p7 = scmp.ne.s32.totalorder %s3371_s27, %s2662_s15  ;;  %p2670_p13 = scmp.lt.s32.totalorder %s2668_s25, %s2662_s15 }
 0x35d   : > { %v1256_v44 = vmul.f32 1.442695, %v1252_v40  ;;  %v1253_v46 = vsub.f32 0.0, %v1249_v41  ;;  %v1250_v47 = vand.u32 2147483647, %v1242_v42  ;;  %v1243_v48 = vadd.f32 %v1239_v43, %v1218_v25  ;;  %v1306_v25 = vpop.permute.xlu0 %1305 }
 0x35e   : > { %v1246_v45 = vmax.f32 %v1242_v42, 0.0  ;;  %p2664_p8 = pnand %p2663_p7, %p3584_p4  ;;  %p2671_p2 = por %p2670_p13, %p2669_p11 }
 0x35f   : > { %v1258_v51 = vmul.f32 1.442695, %v1253_v46  ;;  %v1254_v52 = vsub.f32 0.0, %v1250_v47  ;;  %2440 = vpow2.f32 %v1256_v44  ;;  %v1251_v54 = vand.u32 2147483647, %v1243_v48 }
 0x360   : > { %v1247_v56 = vmax.f32 %v1243_v48, 0.0  ;;  %p2665_p9 = pneg %p2664_p8 }
 0x361   : > { %2442 = vpow2.f32 %v1258_v51  ;;  %v1260_v55 = vmul.f32 1.442695, %v1254_v52  ;;  %v1255_v57 = vsub.f32 0.0, %v1251_v54  ;;  %v1296_v31 = vpop.permute.xlu0 %1295 }
 0x362   : > { %p2672_p6 = pnand %p2671_p2, %p2665_p9 }
 0x363   : > { %2444 = vpow2.f32 %v1260_v55  ;;  %v1262_v58 = vmul.f32 1.442695, %v1255_v57 }
 0x365   : > { %2446 = vpow2.f32 %v1262_v58 }
 0x36c   : > { %v2441_v59 = vpop.eup %2440 }
 0x36d   : > { %v1264_v0 = vadd.f32 1.0, %v2441_v59 }
 0x36e   : > { %v2443_v60 = vpop.eup %2442 }
 0x36f   : > { %v1265_v62 = vadd.f32 1.0, %v2443_v60 }
 0x370   : > { %v2445_v61 = vpop.eup %2444 }
 0x371   : > { %v1266_v1 = vadd.f32 1.0, %v2445_v61 }
 0x372   : > { %v2447_v2 = vpop.eup %2446 }
 0x373   : > { %2448 = vlog2.f32 %v1266_v1  ;;  %v1267_v4 = vadd.f32 1.0, %v2447_v2 }
 0x374   : > { %2450 = vlog2.f32 %v1265_v62 }
 0x375   : > { %2452 = vlog2.f32 %v1264_v0 }
 0x376   : > { %2454 = vlog2.f32 %v1267_v4 }
 0x380   : > { %v2449_v5 = vpop.eup %2448 }
 0x381   : > { %v2451_v3 = vpop.eup %2450  ;;  %v1273_v7 = vmul.f32 0.6931472, %v2449_v5 }
 0x382   : > { %v2453_v63 = vpop.eup %2452  ;;  %v1271_v53 = vmul.f32 0.6931472, %v2451_v3 }
 0x383   : > { %v2455_v6 = vpop.eup %2454  ;;  %v1269_v49 = vmul.f32 0.6931472, %v2453_v63  ;;  %v1278_v12 = vadd.f32 %v1273_v7, %v1246_v45 }
 0x384   : > { %v1275_v8 = vmul.f32 0.6931472, %v2455_v6  ;;  %v1277_v13 = vadd.f32 %v1271_v53, %v1245_v9 }
 0x385   : > { %v1276_v16 = vadd.f32 %v1269_v49, %v1244_v10 }
 0x386   : > { %v1279_v50 = vadd.f32 %v1275_v8, %v1247_v56 }
 0x388   : > { %1349 = vmatprep.subr.mxu0 %v1279_v50 }
 0x389   : > { %1350 = vmatpush1.msra.mxu0 %v1278_v12 }
 0x38a   : > { %1351 = vmatprep.subr.mxu0 %v1277_v13 }
 0x38b   : > { %1352 = vmatpush1.msra.mxu0 %v1276_v16 }
 0x38c   : > { %2247 = vmatmul.mubr.msk.f32.vlgmr.msra.gmra.mxu0 %vm1308_vm2, %v1280_v17 }
 0x38d   : > { %1391 = vmatprep.mubr.f32.mxu0 %v2793_v20 }
 0x390   : > { %2248 = vmatmul.mubr.msk.f32.gmra.mxu0 %vm1308_vm2, %v1281_v18 }
 0x391   : > { %1397 = vmatprep.mubr.f32.mxu0 %v2793_v20 }
 0x394   : > { %2249 = vmatmul.mubr.msk.f32.gmra.mxu0 %vm1308_vm2, %v1282_v21 }
 0x395   : > { %1403 = vmatprep.mubr.f32.mxu0 %v2793_v20 }
 0x398   : > { %2250 = vmatmul.mubr.msk.f32.gmra.mxu0 %vm1308_vm2, %v1283_v22 }
 0x399   : > { %1827 = vmatprep.mubr.f32.mxu0 %v2793_v20 }
 0x44c   : > { %v1387_v26 = vpop.f32.mrf.mxu0 }
 0x44d   : > { %v3272_v34 = vadd.f32 %v1387_v26, %v1291_v27 }
 0x44e   : > { %v1389_v28 = vpop.f32.mrf.mxu0 }
 0x44f   : > { %v3267_v29 = vadd.f32 %v1389_v28, %v1291_v27  ;;  %v1418_v39 = vand.u32 2147483647, %v3272_v34 }
 0x450   : > { %v1393_v32 = vpop.f32.mrf.mxu0 }
 0x451   : > { %v1419_v33 = vand.u32 2147483647, %v3267_v29  ;;  %v3270_v35 = vadd.f32 %v1393_v32, %v1296_v31  ;;  %v1426_v48 = vsub.f32 0.0, %v1418_v39 }
 0x452   : > { %v1395_v36 = vpop.f32.mrf.mxu0 }
 0x453   : > { %v1420_v30 = vand.u32 2147483647, %v3270_v35  ;;  %v3275_v37 = vadd.f32 %v1395_v36, %v1296_v31  ;;  %v1427_v38 = vsub.f32 0.0, %v1419_v33  ;;  %v1434_v0 = vmul.f32 1.442695, %v1426_v48 }
 0x454   : > { %v1399_v23 = vpop.f32.mrf.mxu0  ;;  %v1412_v48 = vmax.f32 %v3270_v35, 0.0  ;;  %v1483_v35 = vld [vmem:[#allocation9 + $0x8] sm:$0xff] }
 0x455   : > { %v3277_v19 = vadd.f32 %v1399_v23, %v1301_v24  ;;  %v1421_v14 = vand.u32 2147483647, %v3275_v37  ;;  %v1428_v15 = vsub.f32 0.0, %v1420_v30  ;;  %v1436_v44 = vmul.f32 1.442695, %v1427_v38 }
 0x456   : > { %v1401_v11 = vpop.f32.mrf.mxu0 }
 0x457   : > { %v1422_v40 = vand.u32 2147483647, %v3277_v19  ;;  %v1429_v41 = vsub.f32 0.0, %v1421_v14  ;;  %v3282_v42 = vadd.f32 %v1401_v11, %v1301_v24  ;;  %v1438_v55 = vmul.f32 1.442695, %v1428_v15 }
 0x458   : > { %v1405_v43 = vpop.f32.mrf.mxu0  ;;  %v1414_v15 = vmax.f32 %v3277_v19, 0.0 }
 0x459   : > { %v1430_v46 = vsub.f32 0.0, %v1422_v40  ;;  %v3284_v47 = vadd.f32 %v1405_v43, %v1306_v25  ;;  %v1440_v51 = vmul.f32 1.442695, %v1429_v41  ;;  %v1423_v52 = vand.u32 2147483647, %v3282_v42 }
 0x45a   : > { %v1407_v54 = vpop.f32.mrf.mxu0  ;;  %v1415_v38 = vmax.f32 %v3282_v42, 0.0  ;;  %v1413_v41 = vmax.f32 %v3275_v37, 0.0  ;;  %v1482_v37 = vld [vmem:[#allocation9] sm:$0xff] }
 0x45b   : > { %v1442_v57 = vmul.f32 1.442695, %v1430_v46  ;;  %v1424_v58 = vand.u32 2147483647, %v3284_v47  ;;  %v1408_v59 = vadd.f32 %v1407_v54, %v1306_v25  ;;  %2456 = vpow2.f32 %v1440_v51 }
 0x45c   : > { %v1431_v60 = vsub.f32 0.0, %v1423_v52  ;;  %2458 = vpow2.f32 %v1436_v44  ;;  %v1416_v30 = vmax.f32 %v3284_v47, 0.0  ;;  %v1411_v47 = vmax.f32 %v3267_v29, 0.0  ;;  %v1484_v29 = vld [vmem:[#allocation9 + $0x10] sm:$0xff] }
 0x45d   : > { %v1432_v61 = vsub.f32 0.0, %v1424_v58  ;;  %v1425_v62 = vand.u32 2147483647, %v1408_v59  ;;  %2460 = vpow2.f32 %v1442_v57  ;;  %v1417_v28 = vmax.f32 %v1408_v59, 0.0  ;;  %v1503_v57 = vpop.permute.xlu1 %1502  ;;  %v1508_v58 = vpop.permute.xlu0 %1507 }
 0x45e   : > { %v1444_v1 = vmul.f32 1.442695, %v1431_v60  ;;  %2462 = vpow2.f32 %v1438_v55  ;;  %v1410_v52 = vmax.f32 %v3272_v34, 0.0  ;;  %v1485_v34 = vld [vmem:[#allocation9 + $0x18] sm:$0xff] }
 0x45f   : > { %v1446_v2 = vmul.f32 1.442695, %v1432_v61  ;;  %v1433_v4 = vsub.f32 0.0, %v1425_v62 }
 0x460   : > { %2464 = vpow2.f32 %v1444_v1 }
 0x461   : > { %2466 = vpow2.f32 %v1446_v2  ;;  %v1448_v5 = vmul.f32 1.442695, %v1433_v4  ;;  %v1493_v60 = vpop.permute.xlu1 %1492 }
 0x462   : > { %2468 = vpow2.f32 %v1434_v0  ;;  %v1498_v0 = vpop.permute.xlu0 %1497 }
 0x463   : > { %2470 = vpow2.f32 %v1448_v5 }
 0x468   : > { %v2457_v3 = vpop.eup %2456 }
 0x469   : > { %v2459_v63 = vpop.eup %2458  ;;  %v1453_v7 = vadd.f32 1.0, %v2457_v3 }
 0x46a   : > { %v2461_v6 = vpop.eup %2460  ;;  %v1451_v13 = vadd.f32 1.0, %v2459_v63 }
 0x46b   : > { %v2463_v56 = vpop.eup %2462  ;;  %v1454_v45 = vadd.f32 1.0, %v2461_v6  ;;  %2472 = vlog2.f32 %v1453_v7 }
 0x46c   : > { %v1452_v12 = vadd.f32 1.0, %v2463_v56 }
 0x46d   : > { %v2465_v8 = vpop.eup %2464 }
 0x46e   : > { %v2467_v53 = vpop.eup %2466  ;;  %v1455_v49 = vadd.f32 1.0, %v2465_v8 }
 0x46f   : > { %v2469_v50 = vpop.eup %2468  ;;  %v1456_v9 = vadd.f32 1.0, %v2467_v53 }
 0x470   : > { %v2471_v10 = vpop.eup %2470  ;;  %2474 = vlog2.f32 %v1455_v49  ;;  %v1450_v17 = vadd.f32 1.0, %v2469_v50 }
 0x471   : > { %2476 = vlog2.f32 %v1456_v9  ;;  %v1457_v16 = vadd.f32 1.0, %v2471_v10 }
 0x472   : > { %2478 = vlog2.f32 %v1454_v45 }
 0x473   : > { %2480 = vlog2.f32 %v1457_v16 }
 0x474   : > { %2482 = vlog2.f32 %v1452_v12 }
 0x475   : > { %2484 = vlog2.f32 %v1451_v13 }
 0x476   : > { %2486 = vlog2.f32 %v1450_v17 }
 0x478   : > { %v2473_v18 = vpop.eup %2472 }
 0x479   : > { %v1465_v14 = vmul.f32 0.6931472, %v2473_v18 }
 0x47b   : > { %v1477_v42 = vadd.f32 %v1465_v14, %v1413_v41 }
 0x47d   : > { %v2475_v21 = vpop.eup %2474 }
 0x47e   : > { %v2477_v22 = vpop.eup %2476  ;;  %v1469_v32 = vmul.f32 0.6931472, %v2475_v21 }
 0x47f   : > { %v2479_v24 = vpop.eup %2478  ;;  %v1471_v26 = vmul.f32 0.6931472, %v2477_v22 }
 0x480   : > { %v2481_v25 = vpop.eup %2480  ;;  %v1467_v36 = vmul.f32 0.6931472, %v2479_v24  ;;  %v1479_v43 = vadd.f32 %v1469_v32, %v1415_v38 }
 0x481   : > { %v2483_v27 = vpop.eup %2482  ;;  %v1473_v31 = vmul.f32 0.6931472, %v2481_v25  ;;  %v1480_v40 = vadd.f32 %v1471_v26, %v1416_v30 }
 0x482   : > { %v2485_v33 = vpop.eup %2484  ;;  %v1463_v11 = vmul.f32 0.6931472, %v2483_v27  ;;  %v1478_v51 = vadd.f32 %v1467_v36, %v1414_v15 }
 0x483   : > { %v2487_v23 = vpop.eup %2486  ;;  %v1481_v39 = vadd.f32 %v1473_v31, %v1417_v28  ;;  %v1461_v44 = vmul.f32 0.6931472, %v2485_v33 }
 0x484   : > { %v1459_v46 = vmul.f32 0.6931472, %v2487_v23  ;;  %v1476_v54 = vadd.f32 %v1463_v11, %v1412_v48 }
 0x485   : > { %1546 = vmatprep.subr.mxu1 %v1481_v39  ;;  %v1475_v19 = vadd.f32 %v1461_v44, %v1411_v47 }
 0x486   : > { %1547 = vmatpush1.msra.mxu1 %v1480_v40  ;;  %v1474_v55 = vadd.f32 %v1459_v46, %v1410_v52 }
 0x487   : > { %1548 = vmatprep.subr.mxu1 %v1479_v43 }
 0x488   : > { %1549 = vmatpush1.msra.mxu1 %v1478_v51 }
 0x489   : > { %1550 = vmatprep.subr.mxu1 %v1477_v42 }
 0x48a   : > { %1551 = vmatpush1.msra.mxu1 %v1476_v54 }
 0x48b   : > { %1552 = vmatprep.subr.mxu1 %v1475_v19 }
 0x48c   : > { %1553 = vmatpush1.msra.mxu1 %v1474_v55 }
 0x48d   : > { %2251 = vmatmul.mubr.msk.f32.vlgmr.msra.gmra.mxu1 %vm929_vm1, %v1482_v37 }
 0x48e   : > { %1592 = vmatprep.mubr.f32.mxu1 %v2793_v20 }
 0x491   : > { %2252 = vmatmul.mubr.msk.f32.gmra.mxu1 %vm929_vm1, %v1483_v35 }
 0x492   : > { %1598 = vmatprep.mubr.f32.mxu1 %v2793_v20 }
 0x495   : > { %2253 = vmatmul.mubr.msk.f32.gmra.mxu1 %vm929_vm1, %v1484_v29 }
 0x496   : > { %1604 = vmatprep.mubr.f32.mxu1 %v2793_v20 }
 0x499   : > { %2254 = vmatmul.mubr.msk.f32.gmra.mxu1 %vm929_vm1, %v1485_v34 }
 0x49a   : > { %1857 = vmatprep.mubr.f32.mxu1 %v2793_v20 }
 0x54d   : > { %v1588_v59 = vpop.f32.mrf.mxu1 }
 0x54e   : > { %v3308_v5 = vadd.f32 %v1588_v59, %v1493_v60 }
 0x54f   : > { %v1590_v61 = vpop.f32.mrf.mxu1 }
 0x550   : > { %v3303_v62 = vadd.f32 %v1590_v61, %v1493_v60  ;;  %v1619_v53 = vand.u32 2147483647, %v3308_v5 }
 0x551   : > { %v1594_v1 = vpop.f32.mrf.mxu1 }
 0x552   : > { %v1620_v2 = vand.u32 2147483647, %v3303_v62  ;;  %v3306_v4 = vadd.f32 %v1594_v1, %v1498_v0  ;;  %v1627_v21 = vsub.f32 0.0, %v1619_v53 }
 0x553   : > { %v1596_v3 = vpop.f32.mrf.mxu1 }
 0x554   : > { %v1621_v63 = vand.u32 2147483647, %v3306_v4  ;;  %v3311_v6 = vadd.f32 %v1596_v3, %v1498_v0  ;;  %v1628_v56 = vsub.f32 0.0, %v1620_v2  ;;  %v1635_v30 = vmul.f32 1.442695, %v1627_v21 }
 0x555   : > { %v1600_v7 = vpop.f32.mrf.mxu1  ;;  %v1613_v21 = vmax.f32 %v3306_v4, 0.0  ;;  %v1683_v4 = vld [vmem:[%s3534_s12] sm:$0xff] }
 0x556   : > { %v3313_v8 = vadd.f32 %v1600_v7, %v1503_v57  ;;  %v1622_v45 = vand.u32 2147483647, %v3311_v6  ;;  %v1629_v50 = vsub.f32 0.0, %v1621_v63  ;;  %v1637_v16 = vmul.f32 1.442695, %v1628_v56 }
 0x557   : > { %v1602_v49 = vpop.f32.mrf.mxu1 }
 0x558   : > { %v1623_v9 = vand.u32 2147483647, %v3313_v8  ;;  %v1630_v10 = vsub.f32 0.0, %v1622_v45  ;;  %v3318_v12 = vadd.f32 %v1602_v49, %v1503_v57  ;;  %v1639_v26 = vmul.f32 1.442695, %v1629_v50 }
 0x559   : > { %v1606_v13 = vpop.f32.mrf.mxu1  ;;  %v1615_v50 = vmax.f32 %v3313_v8, 0.0  ;;  %v1611_v8 = vmax.f32 %v3308_v5, 0.0  ;;  %v1684_v5 = vld [vmem:[%s3534_s12 + $0x8] sm:$0xff] }
 0x55a   : > { %v1631_v17 = vsub.f32 0.0, %v1623_v9  ;;  %v3320_v18 = vadd.f32 %v1606_v13, %v1508_v58  ;;  %v1641_v22 = vmul.f32 1.442695, %v1630_v10  ;;  %v1624_v24 = vand.u32 2147483647, %v3318_v12 }
 0x55b   : > { %v1608_v25 = vpop.f32.mrf.mxu1  ;;  %v1616_v56 = vmax.f32 %v3318_v12, 0.0  ;;  %v1614_v10 = vmax.f32 %v3311_v6, 0.0  ;;  %v1612_v12 = vmax.f32 %v3303_v62, 0.0  ;;  %v1688_v62 = vld [vmem:[%s3534_s12 + $0x28] sm:$0xff] }
 0x55c   : > { %v1643_v27 = vmul.f32 1.442695, %v1631_v17  ;;  %v1625_v28 = vand.u32 2147483647, %v3320_v18  ;;  %v1609_v31 = vadd.f32 %v1608_v25, %v1508_v58  ;;  %2488 = vpow2.f32 %v1641_v22 }
 0x55d   : > { %v1632_v32 = vsub.f32 0.0, %v1624_v24  ;;  %2490 = vpow2.f32 %v1637_v16  ;;  %v1617_v63 = vmax.f32 %v3320_v18, 0.0 }
 0x55e   : > { %v1633_v33 = vsub.f32 0.0, %v1625_v28  ;;  %v1626_v36 = vand.u32 2147483647, %v1609_v31  ;;  %2492 = vpow2.f32 %v1643_v27  ;;  %v1618_v61 = vmax.f32 %v1609_v31, 0.0  ;;  %v1685_v27 = vld [vmem:[%s3534_s12 + $0x10] sm:$0xff]  ;;  %v1690_v28 = vld [vmem:[%s3534_s12 + $0x38] sm:$0xff] }
 0x55f   : > { %v1645_v23 = vmul.f32 1.442695, %v1632_v32  ;;  %2494 = vpow2.f32 %v1639_v26  ;;  %v1689_v26 = vld [vmem:[%s3534_s12 + $0x30] sm:$0xff]  ;;  %v1686_v31 = vld [vmem:[%s3534_s12 + $0x18] sm:$0xff]  ;;  %v1687_v32 = vld [vmem:[%s3534_s12 + $0x20] sm:$0xff] }
 0x560   : > { %v1647_v38 = vmul.f32 1.442695, %v1633_v33  ;;  %v1634_v39 = vsub.f32 0.0, %v1626_v36 }
 0x561   : > { %2496 = vpow2.f32 %v1645_v23 }
 0x562   : > { %2498 = vpow2.f32 %v1647_v38  ;;  %v1649_v14 = vmul.f32 1.442695, %v1634_v39 }
 0x563   : > { %2500 = vpow2.f32 %v1635_v30 }
 0x564   : > { %2502 = vpow2.f32 %v1649_v14 }
 0x569   : > { %v2489_v11 = vpop.eup %2488 }
 0x56a   : > { %v2491_v15 = vpop.eup %2490  ;;  %v1654_v41 = vadd.f32 1.0, %v2489_v11 }
 0x56b   : > { %v2493_v40 = vpop.eup %2492  ;;  %v1652_v19 = vadd.f32 1.0, %v2491_v15 }
 0x56c   : > { %v2495_v43 = vpop.eup %2494  ;;  %v1655_v48 = vadd.f32 1.0, %v2493_v40  ;;  %2504 = vlog2.f32 %v1654_v41 }
 0x56d   : > { %v1653_v54 = vadd.f32 1.0, %v2495_v43 }
 0x56e   : > { %v2497_v44 = vpop.eup %2496 }
 0x56f   : > { %v2499_v46 = vpop.eup %2498  ;;  %v1656_v51 = vadd.f32 1.0, %v2497_v44 }
 0x570   : > { %v2501_v47 = vpop.eup %2500  ;;  %v1657_v42 = vadd.f32 1.0, %v2499_v46 }
 0x571   : > { %v2503_v52 = vpop.eup %2502  ;;  %2506 = vlog2.f32 %v1656_v51  ;;  %v1651_v37 = vadd.f32 1.0, %v2501_v47 }
 0x572   : > { %2508 = vlog2.f32 %v1657_v42  ;;  %v1658_v55 = vadd.f32 1.0, %v2503_v52 }
 0x573   : > { %2510 = vlog2.f32 %v1655_v48 }
 0x574   : > { %2512 = vlog2.f32 %v1658_v55 }
 0x575   : > { %2514 = vlog2.f32 %v1653_v54 }
 0x576   : > { %2516 = vlog2.f32 %v1652_v19 }
 0x577   : > { %2518 = vlog2.f32 %v1651_v37 }
 0x579   : > { %v2505_v35 = vpop.eup %2504 }
 0x57a   : > { %v1666_v45 = vmul.f32 0.6931472, %v2505_v35 }
 0x57c   : > { %v1678_v18 = vadd.f32 %v1666_v45, %v1614_v10 }
 0x57e   : > { %v2507_v29 = vpop.eup %2506 }
 0x57f   : > { %v2509_v34 = vpop.eup %2508  ;;  %v1670_v1 = vmul.f32 0.6931472, %v2507_v29 }
 0x580   : > { %v2511_v57 = vpop.eup %2510  ;;  %v1672_v59 = vmul.f32 0.6931472, %v2509_v34 }
 0x581   : > { %v2513_v58 = vpop.eup %2512  ;;  %v1668_v3 = vmul.f32 0.6931472, %v2511_v57  ;;  %v1680_v13 = vadd.f32 %v1670_v1, %v1616_v56 }
 0x582   : > { %v2515_v60 = vpop.eup %2514  ;;  %v1674_v0 = vmul.f32 0.6931472, %v2513_v58  ;;  %v1681_v9 = vadd.f32 %v1672_v59, %v1617_v63 }
 0x583   : > { %v2517_v2 = vpop.eup %2516  ;;  %v1664_v49 = vmul.f32 0.6931472, %v2515_v60  ;;  %v1679_v22 = vadd.f32 %v1668_v3, %v1615_v50 }
 0x584   : > { %v2519_v7 = vpop.eup %2518  ;;  %v1682_v53 = vadd.f32 %v1674_v0, %v1618_v61  ;;  %v1662_v16 = vmul.f32 0.6931472, %v2517_v2 }
 0x585   : > { %v1660_v17 = vmul.f32 0.6931472, %v2519_v7  ;;  %v1677_v24 = vadd.f32 %v1664_v49, %v1613_v21 }
 0x586   : > { %1787 = vmatprep.subr.mxu0 %v1682_v53  ;;  %2279 = vmatprep.subr.mxu1 %v1682_v53  ;;  %v1676_v6 = vadd.f32 %v1662_v16, %v1612_v12 }
 0x587   : > { %1788 = vmatpush1.msra.mxu0 %v1681_v9  ;;  %2283 = vmatpush1.msra.mxu1 %v1681_v9  ;;  %v1675_v25 = vadd.f32 %v1660_v17, %v1611_v8 }
 0x588   : > { %1789 = vmatprep.subr.mxu0 %v1680_v13  ;;  %2280 = vmatprep.subr.mxu1 %v1680_v13 }
 0x589   : > { %1790 = vmatpush1.msra.mxu0 %v1679_v22  ;;  %2284 = vmatpush1.msra.mxu1 %v1679_v22 }
 0x58a   : > { %1791 = vmatprep.subr.mxu0 %v1678_v18  ;;  %2281 = vmatprep.subr.mxu1 %v1678_v18 }
 0x58b   : > { %1792 = vmatpush1.msra.mxu0 %v1677_v24  ;;  %2285 = vmatpush1.msra.mxu1 %v1677_v24 }
 0x58c   : > { %1793 = vmatprep.subr.mxu0 %v1676_v6  ;;  %2282 = vmatprep.subr.mxu1 %v1676_v6 }
 0x58d   : > { %1794 = vmatpush1.msra.mxu0 %v1675_v25  ;;  %2286 = vmatpush1.msra.mxu1 %v1675_v25 }
 0x58e   : > { %2255 = vmatmul.mubr.msk.f32.vlgmr.msra.gmra.mxu0 %vm929_vm1, %v1683_v4  ;;  %2260 = vmatmul.mubr.msk.f32.vlgmr.msra.gmra.mxu1 %vm929_vm1, %v1688_v62 }
 0x58f   : > { %1833 = vmatprep.mubr.f32.mxu0 %v2793_v20  ;;  %1863 = vmatprep.mubr.f32.mxu1 %v2793_v20 }
 0x592   : > { %2256 = vmatmul.mubr.msk.f32.gmra.mxu0 %vm929_vm1, %v1684_v5  ;;  %2261 = vmatmul.mubr.msk.f32.gmra.mxu1 %vm929_vm1, %v1689_v26 }
 0x593   : > { %1839 = vmatprep.mubr.f32.mxu0 %v2793_v20  ;;  %1869 = vmatprep.mubr.f32.mxu1 %v2793_v20 }
 0x596   : > { %2257 = vmatmul.mubr.msk.f32.gmra.mxu0 %vm929_vm1, %v1685_v27  ;;  %2262 = vmatmul.mubr.msk.f32.gmra.mxu1 %vm929_vm1, %v1690_v28 }
 0x597   : > { %1845 = vmatprep.mubr.f32.mxu0 %v2793_v20 }
 0x59a   : > { %2258 = vmatmul.mubr.msk.f32.gmra.mxu0 %vm929_vm1, %v1686_v31 }
 0x59b   : > { %1851 = vmatprep.mubr.f32.mxu0 %v2793_v20 }
 0x59e   : > { %2259 = vmatmul.mubr.msk.f32.gmra.mxu0 %vm929_vm1, %v1687_v32 }
 0x59f   : > { %2675 = shalt.err (!%p2672_p6)
}
 0x5a0   : > { %s2676_s18 = scalar_lea.hbm %s3383_s16, 512  ;;  %s2680_s21 = scalar_lea.hbm %s3583_s29, 1024 }
 0x5a1   : > { %p2677_p5 = scmp.ne.s32.totalorder %s3383_s16, %s2676_s18  ;;  %p2681_p1 = scmp.lt.s32.totalorder %s3383_s16, %s3583_s29 }
 0x5a2   : > { %p2682_p3 = scmp.lt.s32.totalorder %s2680_s21, %s2676_s18 }
 0x5a3   : > { %p2678_p12 = pnand %p2677_p5, %p3584_p4 }
 0x5a4   : > { %p2683_p7 = por %p2682_p3, %p2681_p1 }
 0x5a5   : > { %p2679_p0 = pneg %p2678_p12 }
 0x5a7   : > { %p2684_p8 = pnand %p2683_p7, %p2679_p0 }
 0x5a9   : > { %2687 = shalt.err (!%p2684_p8)
}
 0x5aa   : > { %s3551_s0 = smov 256   ;;  %s2797_s15 = smov 512  }
 0x5ab   : > { %s2798_s25 = smov 16   ;;  %s3585_s26 = sld [smem:[#allocation28_spill]] }
 0x5ac   : > { %2300 = dma.vmem_to_hbm [thread:$0]  (%p3584_p4), %s3371_s27, 512, %s3383_s16, %s3385_s30, %s3551_s0, %s2797_s15, %s2798_s25  }
 0x5ad   : > { %s1981_s21 = scalar_lea.sflag [#allocation6], %s3018_s2  ;;  %s2688_s28 = scalar_lea.vmem %s3377_s19, 512 }
 0x5ae   : > { %p2689_p9 = scmp.ne.s32.totalorder %s3377_s19, %s2688_s28  ;;  %s2799_s3 = smov [#allocation10]  }
 0x5af   : > { %s2692_s4 = sshll.u32 %s2799_s3, 4  ;;  %s2693_s4 = int_to_ptr.vmem [resolvable:$false] %s2692_s4 }
 0x5b0   : > { %p2690_p11 = pnand %p2689_p9, %p3584_p4  ;;  %s2694_s5 = scalar_lea.vmem %s2693_s4, 1024 }
 0x5b1   : > { %s3415_s14 = scalar_lea.hbm %s3585_s26, %s3375_s20  ;;  %p2695_p2 = scmp.lt.s32.totalorder %s3377_s19, %s2693_s4 }
 0x5b2   : > { %p2691_p13 = pneg %p2690_p11  ;;  %p2696_p6 = scmp.lt.s32.totalorder %s2694_s5, %s2688_s28 }
 0x5b4   : > { %p2697_p5 = por %p2696_p6, %p2695_p2 }
 0x5b6   : > { %p2698_p12 = pnand %p2697_p5, %p2691_p13 }
 0x5b8   : > { %2701 = shalt.err (!%p2698_p12)
}
 0x5b9   : > { %s2702_s27 = scalar_lea.hbm %s3415_s14, 512  ;;  %s2706_s3 = scalar_lea.hbm %s3585_s26, 1024 }
 0x5ba   : > { %p2703_p0 = scmp.ne.s32.totalorder %s3415_s14, %s2702_s27  ;;  %p2707_p7 = scmp.lt.s32.totalorder %s3415_s14, %s3585_s26 }
 0x5bb   : > { %p2708_p8 = scmp.lt.s32.totalorder %s2706_s3, %s2702_s27 }
 0x5bc   : > { %p2704_p1 = pnand %p2703_p0, %p3584_p4 }
 0x5bd   : > { %p2709_p9 = por %p2708_p8, %p2707_p7 }
 0x5be   : > { %p2705_p3 = pneg %p2704_p1 }
 0x5c0   : > { %p2710_p11 = pnand %p2709_p9, %p2705_p3 }
 0x5c2   : > { %2713 = shalt.err (!%p2710_p11)
}
 0x5c3   : > { %s3586_s4 = smov 256   ;;  %v1702_v20 = vpop.permute.xlu0 %1701  ;;  %v1707_v33 = vpop.permute.xlu1 %1706  ;;  %s3587_s5 = sshll.u32 %s3018_s2, 7 }
 0x5c4   : > { %2299 = dma.vmem_to_hbm [thread:$0]  (%p3584_p4), %s3377_s19, 512, %s3415_s14, %s1981_s21, %s3586_s4, %s2797_s15, %s2798_s25  }
 0x5c5   : > { %s3451_s19 = scalar_lea.vmem [#allocation13], %s3587_s5  ;;  %s3588_s21 = sld [smem:[#allocation30_spill]] }
 0x5c6   : > { %s2036_s2 = sshll.u32 %s3451_s19, 4  ;;  %s2800_s1 = smov [#allocation13]   ;;  %s3475_s2 = int_to_ptr.vmem [resolvable:$true] %s2036_s2 }
 0x5c7   : > { %v1712_v36 = vpop.permute.xlu0 %1711  ;;  %v3441_v30 = vpop.permute.xlu1 %1716  ;;  %s2714_s16 = scalar_lea.vmem %s3475_s2, 2048  ;;  %s2718_s3 = sshll.u32 %s2800_s1, 4  ;;  %s2719_s3 = int_to_ptr.vmem [resolvable:$false] %s2718_s3 }
 0x5c8   : > { %p2715_p13 = scmp.ne.s32.totalorder %s3475_s2, %s2714_s16  ;;  %s2720_s18 = scalar_lea.vmem %s2719_s3, 4096 }
 0x5c9   : > { %p2721_p5 = scmp.lt.s32.totalorder %s3475_s2, %s2719_s3  ;;  %p2722_p12 = scmp.lt.s32.totalorder %s2720_s18, %s2714_s16 }
 0x5ca   : > { %p2716_p2 = pnand %p2715_p13, %p3584_p4 }
 0x5cb   : > { %v3443_v23 = vpop.permute.xlu0 %1721  ;;  %v1727_v38 = vpop.permute.xlu1 %1726  ;;  %s3589_s28 = smov %s3588_s21  ;;  %s3473_s27 = scalar_lea.hbm %s3588_s21, %s3375_s20 }
 0x5cc   : > { %p2717_p6 = pneg %p2716_p2  ;;  %p2723_p0 = por %p2722_p12, %p2721_p5 }
 0x5ce   : > { %p2724_p1 = pnand %p2723_p0, %p2717_p6 }
 0x5cf   : > { %v1732_v42 = vpop.permute.xlu0 %1731  ;;  %v1737_v57 = vpop.permute.xlu1 %1736 }
 0x64e   : > { %v1829_v39 = vpop.f32.mrf.mxu0  ;;  %v1859_v14 = vpop.f32.mrf.mxu1 }
 0x64f   : > { %v1830_v11 = vadd.f32 %v1829_v39, %v1702_v20  ;;  %v1860_v15 = vadd.f32 %v1859_v14, %v1727_v38 }
 0x650   : > { %v1831_v40 = vpop.f32.mrf.mxu0  ;;  %v1861_v41 = vpop.f32.mrf.mxu1 }
 0x651   : > { %v1876_v43 = vsub.f32 0.0, %v1830_v11  ;;  %v1886_v44 = vsub.f32 0.0, %v1860_v15  ;;  %v1832_v46 = vadd.f32 %v1831_v40, %v1702_v20  ;;  %v1862_v48 = vadd.f32 %v1861_v41, %v1727_v38 }
 0x652   : > { %v1835_v51 = vpop.f32.mrf.mxu0  ;;  %v1865_v47 = vpop.f32.mrf.mxu1 }
 0x653   : > { %v1892_v52 = vmul.f32 1.442695, %v1876_v43  ;;  %v1912_v54 = vmul.f32 1.442695, %v1886_v44  ;;  %v1877_v19 = vsub.f32 0.0, %v1832_v46  ;;  %v1887_v55 = vsub.f32 0.0, %v1862_v48 }
 0x654   : > { %v1836_v37 = vadd.f32 %v1835_v51, %v1707_v33  ;;  %v1866_v35 = vadd.f32 %v1865_v47, %v1732_v42  ;;  %v1837_v29 = vpop.f32.mrf.mxu0  ;;  %v1867_v34 = vpop.f32.mrf.mxu1 }
 0x655   : > { %2520 = vpow2.f32 %v1892_v52  ;;  %v1894_v58 = vmul.f32 1.442695, %v1877_v19  ;;  %v1914_v59 = vmul.f32 1.442695, %v1887_v55  ;;  %v1838_v60 = vadd.f32 %v1837_v29, %v1707_v33 }
 0x656   : > { %2522 = vpow2.f32 %v1912_v54  ;;  %v1878_v61 = vsub.f32 0.0, %v1836_v37  ;;  %v1888_v0 = vsub.f32 0.0, %v1866_v35  ;;  %v1868_v1 = vadd.f32 %v1867_v34, %v1732_v42  ;;  %v1841_v2 = vpop.f32.mrf.mxu0  ;;  %v1871_v3 = vpop.f32.mrf.mxu1 }
 0x657   : > { %2524 = vpow2.f32 %v1894_v58  ;;  %v1879_v63 = vsub.f32 0.0, %v1838_v60  ;;  %v1842_v7 = vadd.f32 %v1841_v2, %v1712_v36  ;;  %v1872_v56 = vadd.f32 %v1871_v3, %v1737_v57 }
 0x658   : > { %2526 = vpow2.f32 %v1914_v59  ;;  %v1896_v53 = vmul.f32 1.442695, %v1878_v61  ;;  %v1916_v45 = vmul.f32 1.442695, %v1888_v0  ;;  %v1889_v49 = vsub.f32 0.0, %v1868_v1  ;;  %v1843_v50 = vpop.f32.mrf.mxu0  ;;  %v1873_v9 = vpop.f32.mrf.mxu1 }
 0x659   : > { %v1898_v10 = vmul.f32 1.442695, %v1879_v63  ;;  %v1880_v13 = vsub.f32 0.0, %v1842_v7  ;;  %v1890_v16 = vsub.f32 0.0, %v1872_v56  ;;  %v1844_v17 = vadd.f32 %v1843_v50, %v1712_v36 }
 0x65a   : > { %2528 = vpow2.f32 %v1896_v53  ;;  %v1918_v21 = vmul.f32 1.442695, %v1889_v49  ;;  %v1874_v22 = vadd.f32 %v1873_v9, %v1737_v57  ;;  %v1847_v12 = vpop.f32.mrf.mxu0 }
 0x65b   : > { %2530 = vpow2.f32 %v1916_v45  ;;  %v1900_v18 = vmul.f32 1.442695, %v1880_v13  ;;  %v1920_v8 = vmul.f32 1.442695, %v1890_v16  ;;  %v1881_v24 = vsub.f32 0.0, %v1844_v17 }
 0x65c   : > { %2532 = vpow2.f32 %v1898_v10  ;;  %v1891_v6 = vsub.f32 0.0, %v1874_v22  ;;  %v1848_v25 = vadd.f32 %v1847_v12, %v3441_v30  ;;  %v1849_v4 = vpop.f32.mrf.mxu0 }
 0x65d   : > { %2534 = vpow2.f32 %v1918_v21  ;;  %v1902_v62 = vmul.f32 1.442695, %v1881_v24  ;;  %v1850_v5 = vadd.f32 %v1849_v4, %v3441_v30 }
 0x65e   : > { %2536 = vpow2.f32 %v1900_v18  ;;  %v1922_v26 = vmul.f32 1.442695, %v1891_v6  ;;  %v1882_v27 = vsub.f32 0.0, %v1848_v25  ;;  %v1853_v28 = vpop.f32.mrf.mxu0 }
 0x65f   : > { %2538 = vpow2.f32 %v1920_v8  ;;  %v1883_v31 = vsub.f32 0.0, %v1850_v5  ;;  %v1854_v32 = vadd.f32 %v1853_v28, %v3443_v23 }
 0x660   : > { %2540 = vpow2.f32 %v1902_v62  ;;  %v1904_v20 = vmul.f32 1.442695, %v1882_v27  ;;  %v1855_v43 = vpop.f32.mrf.mxu0 }
 0x661   : > { %2542 = vpow2.f32 %v1922_v26  ;;  %v1906_v33 = vmul.f32 1.442695, %v1883_v31  ;;  %v1884_v36 = vsub.f32 0.0, %v1854_v32  ;;  %v1856_v47 = vadd.f32 %v1855_v43, %v3443_v23 }
 0x662   : > { %v2521_v38 = vpop.eup %2520  ;;  %2544 = vpow2.f32 %v1904_v20 }
 0x663   : > { %v2523_v39 = vpop.eup %2522  ;;  %v1924_v14 = vadd.f32 1.0, %v2521_v38  ;;  %2546 = vpow2.f32 %v1906_v33  ;;  %v1908_v41 = vmul.f32 1.442695, %v1884_v36  ;;  %v1885_v34 = vsub.f32 0.0, %v1856_v47 }
 0x664   : > { %v2525_v11 = vpop.eup %2524  ;;  %v1934_v30 = vadd.f32 1.0, %v2523_v39 }
 0x665   : > { %v2527_v15 = vpop.eup %2526  ;;  %2548 = vrcp.f32 %v1924_v14  ;;  %v1925_v40 = vadd.f32 1.0, %v2525_v11  ;;  %v1910_v2 = vmul.f32 1.442695, %v1885_v34 }
 0x666   : > { %2550 = vrcp.f32 %v1934_v30  ;;  %v1935_v44 = vadd.f32 1.0, %v2527_v15 }
 0x667   : > { %v2529_v46 = vpop.eup %2528  ;;  %2552 = vrcp.f32 %v1925_v40 }
 0x668   : > { %v2531_v48 = vpop.eup %2530  ;;  %2554 = vrcp.f32 %v1935_v44  ;;  %v1926_v51 = vadd.f32 1.0, %v2529_v46 }
 0x669   : > { %v2533_v42 = vpop.eup %2532  ;;  %v1936_v52 = vadd.f32 1.0, %v2531_v48  ;;  %2556 = vpow2.f32 %v1908_v41 }
 0x66a   : > { %v2535_v54 = vpop.eup %2534  ;;  %2558 = vrcp.f32 %v1926_v51  ;;  %v1927_v19 = vadd.f32 1.0, %v2533_v42 }
 0x66b   : > { %v2537_v55 = vpop.eup %2536  ;;  %2560 = vrcp.f32 %v1936_v52  ;;  %v1937_v37 = vadd.f32 1.0, %v2535_v54 }
 0x66c   : > { %v2539_v35 = vpop.eup %2538  ;;  %2562 = vrcp.f32 %v1927_v19  ;;  %v1928_v29 = vadd.f32 1.0, %v2537_v55 }
 0x66d   : > { %v2541_v57 = vpop.eup %2540  ;;  %2564 = vrcp.f32 %v1937_v37  ;;  %v1938_v58 = vadd.f32 1.0, %v2539_v35 }
 0x66e   : > { %v2543_v59 = vpop.eup %2542  ;;  %2566 = vrcp.f32 %v1928_v29  ;;  %v1929_v23 = vadd.f32 1.0, %v2541_v57 }
 0x66f   : > { %v2545_v60 = vpop.eup %2544  ;;  %2568 = vrcp.f32 %v1938_v58  ;;  %v1939_v61 = vadd.f32 1.0, %v2543_v59 }
 0x670   : > { %v2547_v0 = vpop.eup %2546  ;;  %2570 = vrcp.f32 %v1929_v23  ;;  %v1930_v1 = vadd.f32 1.0, %v2545_v60 }
 0x671   : > { %2572 = vrcp.f32 %v1939_v61  ;;  %v1931_v3 = vadd.f32 1.0, %v2547_v0 }
 0x672   : > { %v2549_v63 = vpop.eup %2548  ;;  %2574 = vrcp.f32 %v1930_v1 }
 0x673   : > { %v2551_v7 = vpop.eup %2550  ;;  %1964 = vst [vmem:[%s3451_s19] sm:$0xff] %v2549_v63  ;;  %2576 = vrcp.f32 %v1931_v3 }
 0x674   : > { %v2553_v56 = vpop.eup %2552  ;;  %1974 = vst [vmem:[%s3451_s19 + $0x50] sm:$0xff] %v2551_v7  ;;  %2578 = vpow2.f32 %v1910_v2 }
 0x675   : > { %v2555_v53 = vpop.eup %2554  ;;  %1965 = vst [vmem:[%s3451_s19 + $0x8] sm:$0xff] %v2553_v56 }
 0x676   : > { %v2557_v45 = vpop.eup %2556  ;;  %1975 = vst [vmem:[%s3451_s19 + $0x58] sm:$0xff] %v2555_v53 }
 0x677   : > { %v2559_v49 = vpop.eup %2558  ;;  %v1932_v50 = vadd.f32 1.0, %v2557_v45 }
 0x678   : > { %v2561_v9 = vpop.eup %2560  ;;  %1966 = vst [vmem:[%s3451_s19 + $0x10] sm:$0xff] %v2559_v49 }
 0x679   : > { %v2563_v10 = vpop.eup %2562  ;;  %1976 = vst [vmem:[%s3451_s19 + $0x60] sm:$0xff] %v2561_v9  ;;  %2580 = vrcp.f32 %v1932_v50 }
 0x67a   : > { %v2565_v13 = vpop.eup %2564  ;;  %1967 = vst [vmem:[%s3451_s19 + $0x18] sm:$0xff] %v2563_v10 }
 0x67b   : > { %v2567_v16 = vpop.eup %2566  ;;  %1977 = vst [vmem:[%s3451_s19 + $0x68] sm:$0xff] %v2565_v13 }
 0x67c   : > { %v2569_v17 = vpop.eup %2568  ;;  %1968 = vst [vmem:[%s3451_s19 + $0x20] sm:$0xff] %v2567_v16 }
 0x67d   : > { %v2571_v21 = vpop.eup %2570  ;;  %1978 = vst [vmem:[%s3451_s19 + $0x70] sm:$0xff] %v2569_v17 }
 0x67e   : > { %v2573_v22 = vpop.eup %2572  ;;  %1969 = vst [vmem:[%s3451_s19 + $0x28] sm:$0xff] %v2571_v21 }
 0x67f   : > { %v2575_v12 = vpop.eup %2574  ;;  %1979 = vst [vmem:[%s3451_s19 + $0x78] sm:$0xff] %v2573_v22 }
 0x680   : > { %v2577_v18 = vpop.eup %2576  ;;  %1970 = vst [vmem:[%s3451_s19 + $0x30] sm:$0xff] %v2575_v12 }
 0x681   : > { %v2579_v8 = vpop.eup %2578  ;;  %1971 = vst [vmem:[%s3451_s19 + $0x38] sm:$0xff] %v2577_v18 }
 0x682   : > { %v1933_v24 = vadd.f32 1.0, %v2579_v8 }
 0x684   : > { %2582 = vrcp.f32 %v1933_v24 }
 0x686   : > { %v2581_v6 = vpop.eup %2580 }
 0x687   : > { %1972 = vst [vmem:[%s3451_s19 + $0x40] sm:$0xff] %v2581_v6 }
 0x691   : > { %v2583_v25 = vpop.eup %2582 }
 0x692   : > { %1973 = vst [vmem:[%s3451_s19 + $0x48] sm:$0xff] %v2583_v25 }
 0x693   : > { %2727 = shalt.err (!%p2724_p1)
}
 0x694   : > { %s2728_s20 = scalar_lea.hbm %s3473_s27, 2048  ;;  %s2732_s0 = scalar_lea.hbm %s3589_s28, 4096 }
 0x695   : > { %p2729_p3 = scmp.ne.s32.totalorder %s3473_s27, %s2728_s20  ;;  %p2733_p9 = scmp.lt.s32.totalorder %s3473_s27, %s3589_s28 }
 0x696   : > { %p2734_p11 = scmp.lt.s32.totalorder %s2732_s0, %s2728_s20 }
 0x697   : > { %p2730_p7 = pnand %p2729_p3, %p3584_p4 }
 0x698   : > { %p2735_p13 = por %p2734_p11, %p2733_p9 }
 0x699   : > { %p2731_p8 = pneg %p2730_p7 }
 0x69b   : > { %p2736_p2 = pnand %p2735_p13, %p2731_p8 }
 0x69d   : > { %2739 = shalt.err (!%p2736_p2)
}
 0x69e   : > { %2301 = dma.vmem_to_hbm [thread:$0]  (%p3584_p4), %s3475_s2, 2048, %s3473_s27, %s3385_s30, %s3586_s4, %s2797_s15, %s2798_s25  }
 0x69f PF: > { %s3590_s16 = sld [smem:[#allocation18_spill]] }
 0x6a0   : > { %s3591_s1 = sld [smem:[#allocation21_spill]] }
 0x6a5   : > { %s2051_s3 = sand.u32 1, %s3590_s16  }
 0x6a6   : > { %p3592_p6 = scmp.ne.s32.totalorder %s3591_s1, 0  ;;  %s2052_s18 = scalar_lea.sflag [#allocation6], %s2051_s3 }
 0x6a8   : > { %p2316_p5 = pnand %p2219_p10, %p3592_p6 }
 0x6aa   : > { %p2317_p12 = pneg %p2316_p5 }
 0x6ac   : > { %2765 = dma.done.wait (%p2317_p12), %s2052_s18, 512  }
 0x6ad   : > { %2767 = vsyncadd (%p2317_p12), %s2052_s18, 4294966784  ;;  %s3593_s17 = sadd.s32 4294967294, %s2786_s24  }
 0x6ae   : > { %s2060_s20 = sand.u32 1, %s3593_s17  }
 0x6af   : > { %s2061_s5 = scalar_lea.sflag [#allocation12], %s2060_s20 }
 0x6b0   : > { %2769 = dma.done.wait (%p2317_p12), %s2061_s5, 2560  }
 0x6b1   : > { %2771 = vsyncadd (%p2317_p12), %s2061_s5, 4294964736  ;;  %s3594_s24 = sld [smem:[#allocation19_spill]]  ;;  %s3596_s21 = smov %s2778_s22 }
 0x6b2   : > { %s3595_s30 = sld [smem:[#allocation20_spill]]  ;;  %s3597_s22 = smov %s2782_s23 }
 0x6b7   : > { %p32_p4 = scmp.ge.s32.totalorder %s3594_s24, 4  }
 0x6b8   : > { %s3598_s23 = smov %s3595_s30 }
 0x6b9   :  { %34 = sbr.rel (!%p32_p4) target bundleno = 17 (0x11), region = 215 }
 0x6be   :  { %2075 = vsyncpa [#allocation5], 1 }
 0x6bf   :  { %2077 = vsyncpa [#allocation5 + $0x1], 1 }
 0x6c0   :  { %2078 = vsyncpa [#allocation8], 1 }
 0x6c1   :  { %2079 = vsyncpa [#allocation6], 1 }
 0x6c2   :  { %2081 = vsyncpa [#allocation6 + $0x1], 1 }
 0x6c3   :  { %2082 = vsyncpa [#allocation12], 1 }
 0x6c4   :  { %2084 = vsyncpa [#allocation12 + $0x1], 1 }

</bundles_post_ra>
